<compile_context>
chip_gen: v7x
topology: tpu7x:2x2x1
jax: 0.10.0
libtpu: 0.0.40
codegen_flags: <defaults>
</compile_context>

<pallas_src>
import functools

import jax
import jax.numpy as jnp
import numpy as np
from jax import lax
from jax.experimental import pallas as pl
from jax.experimental.pallas import tpu as pltpu


# ----------------------------- Pallas kernel ------------------------------- #

def _encoder_kernel(x_ref, w1_ref, b1_ref, w2_ref, b2_ref, p1sel_ref, p2sel_ref,
                    o_ref, marg1_ref, slab1_ref, marg2_ref, slab2_ref, *, H, W):
    """Fused conv1+ReLU+pool1+conv2+ReLU+pool2 for one sample.

    x_ref    : (1, Cin, H*W)          raw NCHW input, spatial flattened on lanes.
    w1_ref   : (C1, 9*Cin)            taps ordered (ky, kx, cin).
    b1_ref   : (C1, 1)
    w2_ref   : (C2, 9*C1)
    b2_ref   : (C2, 1)
    p1sel_ref: (4, H*W,   H1*W1)      one-hot 2x2-window gather matrices.
    p2sel_ref: (4, H1*W1, H2*W2)
    o_ref    : (1, C2, H2*W2)         channel-major pooled features.
    marg*_ref: (C, N + 2*(W+1))       zero-margined flat input (VMEM scratch).
    slab*_ref: (9*C, N)               im2col slab (VMEM scratch).
    """

    def conv3x3_relu(x, marg_ref, slab_ref, w_ref, b_ref, height, width):
        # x: (C, height*width)  ->  "same" 3x3 conv + bias + ReLU, (Cout, n).
        C, n = x.shape
        m = width + 1                          # margin covers |shift| <= W+1
        # Halo-only zeroing: just the two margins; interior overwritten below.
        marg_ref[:, :m] = jnp.zeros((C, m), jnp.float32)
        marg_ref[:, m + n:2 * m + n] = jnp.zeros((C, m), jnp.float32)
        marg_ref[:, m:m + n] = x
        # w-coordinate of every lane; masks the horizontal padding taps (the
        # vertical padding is already handled by the zero margins).
        wcol = lax.broadcasted_iota(jnp.int32, (C, n), 1) % width
        # Build the im2col slab in VMEM: rows ordered (ky, kx, cin).
        for ky in range(3):
            for kx in range(3):
                s = (ky - 1) * width + (kx - 1)
                tap = marg_ref[:, m + s:m + s + n]           # (C, n) lane slice
                if kx == 0:
                    tap = jnp.where(wcol > 0, tap, 0.0)
                elif kx == 2:
                    tap = jnp.where(wcol < width - 1, tap, 0.0)
                k = ky * 3 + kx
                slab_ref[k * C:(k + 1) * C, :] = tap
        # Single deep-K MXU matmul per layer (K = 9*Cin).  f32 operands kept
        # for exact parity with the f32 reference; cast to bf16 on v6e/v7x.
        y = jnp.dot(w_ref[...], slab_ref[...],
                    preferred_element_type=jnp.float32)
        return jnp.maximum(y + b_ref[...], 0.0)

    def maxpool2x2(y, sel_ref):
        # sel_ref[r] is a one-hot (n, n_out) gather matrix picking window tap r
        # of each 2x2 window; elementwise max of the four gathered maps equals
        # MaxPool2d(2).  Gathering via tiny MXU matmuls avoids strided lane
        # selects and VMEM scratch round trips entirely.
        out = jnp.dot(y, sel_ref[0], preferred_element_type=jnp.float32)
        for r in range(1, 4):
            out = jnp.maximum(
                out, jnp.dot(y, sel_ref[r], preferred_element_type=jnp.float32))
        return out

    H1, W1 = H // 2, W // 2

    x = x_ref[0]                                              # (Cin, H*W)
    y1 = conv3x3_relu(x, marg1_ref, slab1_ref, w1_ref, b1_ref, H, W)
    p1 = maxpool2x2(y1, p1sel_ref)                            # (C1, H1*W1)
    y2 = conv3x3_relu(p1, marg2_ref, slab2_ref, w2_ref, b2_ref, H1, W1)
    p2 = maxpool2x2(y2, p2sel_ref)                            # (C2, H2*W2)
    o_ref[0] = p2                                             # channel-major


# ------------------------------ JAX wrappers -------------------------------- #

def _pool_select_matrices(H, W):
    """(4, H*W, (H//2)*(W//2)) one-hot gather matrices for 2x2 max pooling."""
    H1, W1 = H // 2, W // 2
    n = np.arange(H * W)
    m = np.arange(H1 * W1)
    base = (m // W1) * 2 * W + (m % W1) * 2          # flat index of window corner
    offs = np.array([0, 1, W, W + 1])                # the four window taps
    sel = (n[None, :, None] == (base[None, None, :] + offs[:, None, None]))
    return jnp.asarray(sel.astype(np.float32))


def encoder_features(x_nchw, params):
    """Runs the fused kernel; returns channel-major features (B, C2, H2*W2)."""
    w1, b1, w2, b2 = params                          # HWIO weights, (C,) biases
    B, Cin, H, W = x_nchw.shape
    C1, C2 = w1.shape[-1], w2.shape[-1]
    assert H % 4 == 0 and W % 4 == 0, "two 2x2 pools need H, W multiples of 4"
    H1, W1 = H // 2, W // 2
    H2, W2 = H1 // 2, W1 // 2
    N, N1, N2 = H * W, H1 * W1, H2 * W2

    # Free contiguous reshape (NO pad / transpose HBM pass): NCHW spatial goes
    # straight onto the lane axis.
    xf = x_nchw.reshape(B, Cin, N).astype(jnp.float32)

    # (Cout, 9*Cin) weight matrices, K ordered (ky, kx, cin) to match the slab.
    w1m = jnp.transpose(w1.astype(jnp.float32).reshape(9 * Cin, C1))
    w2m = jnp.transpose(w2.astype(jnp.float32).reshape(9 * C1, C2))
    b1m = b1.astype(jnp.float32).reshape(C1, 1)
    b2m = b2.astype(jnp.float32).reshape(C2, 1)

    p1sel = _pool_select_matrices(H, W)              # (4, N,  N1)
    p2sel = _pool_select_matrices(H1, W1)            # (4, N1, N2)

    kernel = functools.partial(_encoder_kernel, H=H, W=W)
    return pl.pallas_call(
        kernel,
        out_shape=jax.ShapeDtypeStruct((B, C2, N2), jnp.float32),
        grid_spec=pltpu.PrefetchScalarGridSpec(
            num_scalar_prefetch=0,
            grid=(B,),
            in_specs=[
                pl.BlockSpec((1, Cin, N), lambda b: (b, 0, 0)),
                pl.BlockSpec((C1, 9 * Cin), lambda b: (0, 0)),
                pl.BlockSpec((C1, 1), lambda b: (0, 0)),
                pl.BlockSpec((C2, 9 * C1), lambda b: (0, 0)),
                pl.BlockSpec((C2, 1), lambda b: (0, 0)),
                pl.BlockSpec((4, N, N1), lambda b: (0, 0, 0)),
                pl.BlockSpec((4, N1, N2), lambda b: (0, 0, 0)),
            ],
            out_specs=pl.BlockSpec((1, C2, N2), lambda b: (b, 0, 0)),
            scratch_shapes=[
                pltpu.VMEM((Cin, N + 2 * (W + 1)), jnp.float32),   # conv1 margins
                pltpu.VMEM((9 * Cin, N), jnp.float32),             # conv1 im2col
                pltpu.VMEM((C1, N1 + 2 * (W1 + 1)), jnp.float32),  # conv2 margins
                pltpu.VMEM((9 * C1, N1), jnp.float32),             # conv2 im2col
            ],
        ),
        compiler_params=pltpu.CompilerParams(
            dimension_semantics=("parallel",),        # batch across TCs on v7x
            vmem_limit_bytes=32 * 1024 * 1024,
        ),
    )(xf, w1m, b1m, w2m, b2m, p1sel, p2sel)


def layer2_forward(x_nchw, params):
    """Forward pass of the `layer2` module.  x_nchw: (B, 3, H, W) float32."""
    feat_c_hw = encoder_features(x_nchw, params)     # (B, C2, H2*W2)
    B = feat_c_hw.shape[0]
    # Kernel output is already channel-major, so PyTorch's NCHW Flatten is a
    # free contiguous reshape (no transpose / extra HBM pass).
    feat = feat_c_hw.reshape(B, -1)
    # TODO(synk): DoubleOutput definition unavailable upstream; features twice.
    return feat, feat


def init_params(key):
    k1, k2, k3, k4 = jax.random.split(key, 4)
    w1 = jax.random.normal(k1, (3, 3, 3, 8), jnp.float32) * 0.1   # HWIO
    b1 = jax.random.normal(k2, (8,), jnp.float32) * 0.01
    w2 = jax.random.normal(k3, (3, 3, 8, 16), jnp.float32) * 0.1
    b2 = jax.random.normal(k4, (16,), jnp.float32) * 0.01
    return (w1, b1, w2, b2)


def _reference_forward(x_nchw, params):
    """Pure-XLA reference (conv + reduce_window) for a numerics check."""
    w1, b1, w2, b2 = params
    x = jnp.transpose(x_nchw, (0, 2, 3, 1)).astype(jnp.float32)

    def conv_relu(t, w, b):
        y = jax.lax.conv_general_dilated(
            t, w.astype(jnp.float32), window_strides=(1, 1), padding="SAME",
            dimension_numbers=("NHWC", "HWIO", "NHWC"))
        return jnp.maximum(y + b.astype(jnp.float32), 0.0)

    def pool(t):
        return jax.lax.reduce_window(t, -jnp.inf, jax.lax.max,
                                     (1, 2, 2, 1), (1, 2, 2, 1), "VALID")

    y = pool(conv_relu(x, w1, b1))
    y = pool(conv_relu(y, w2, b2))
    B = y.shape[0]
    return jnp.transpose(y, (0, 3, 1, 2)).reshape(B, -1)


if __name__ == "__main__":
    key = jax.random.PRNGKey(0)
    kx, kp = jax.random.split(key)
    # Small RGB batch: B=2, C=3, 16x16 spatial (module implies 3-channel input).
    x = jax.random.normal(kx, (2, 3, 16, 16), jnp.float32)
    params = init_params(kp)

    out_a, out_b = jax.jit(layer2_forward)(x, params)
    jax.block_until_ready((out_a, out_b))

    assert out_a.shape == (2, 16 * 4 * 4)
    assert out_b.shape == (2, 16 * 4 * 4)
    assert bool(jnp.all(out_a == out_b))

    ref = _reference_forward(x, params)
    assert jnp.allclose(out_a, ref, rtol=1e-3, atol=1e-3), float(
        jnp.max(jnp.abs(out_a - ref)))

    print("KERNEL_OK")
</pallas_src>

<mosaic_0001>
module attributes {stable_mosaic.version = 11 : i64} {
  func.func @_encoder_kernel(%arg0: i32, %arg1: memref<1x3x256xf32, #tpu.memory_space<vmem>>, %arg2: memref<8x27xf32, #tpu.memory_space<vmem>>, %arg3: memref<8x1xf32, #tpu.memory_space<vmem>>, %arg4: memref<16x72xf32, #tpu.memory_space<vmem>>, %arg5: memref<16x1xf32, #tpu.memory_space<vmem>>, %arg6: memref<4x256x64xf32, #tpu.memory_space<vmem>>, %arg7: memref<4x64x16xf32, #tpu.memory_space<vmem>>, %arg8: memref<1x16x16xf32, #tpu.memory_space<vmem>>, %arg9: memref<3x290xf32, #tpu.memory_space<vmem>>, %arg10: memref<27x256xf32, #tpu.memory_space<vmem>>, %arg11: memref<8x82xf32, #tpu.memory_space<vmem>>, %arg12: memref<72x64xf32, #tpu.memory_space<vmem>>) attributes {dimension_semantics = [#tpu.dimension_semantics<parallel>], iteration_bounds = array<i64: 2>, scalar_prefetch = 0 : i64, scratch_operands = 4 : i64, tpu.core_type = #tpu.core_type<tc>, window_params = [{transform_indices = @transform_0, window_bounds = array<i64: 1, 3, 256>}, {pipeline_mode = #tpu.pipeline_mode<synchronous>, transform_indices = @transform_1, window_bounds = array<i64: 8, 27>}, {pipeline_mode = #tpu.pipeline_mode<synchronous>, transform_indices = @transform_2, window_bounds = array<i64: 8, 1>}, {pipeline_mode = #tpu.pipeline_mode<synchronous>, transform_indices = @transform_3, window_bounds = array<i64: 16, 72>}, {pipeline_mode = #tpu.pipeline_mode<synchronous>, transform_indices = @transform_4, window_bounds = array<i64: 16, 1>}, {pipeline_mode = #tpu.pipeline_mode<synchronous>, transform_indices = @transform_5, window_bounds = array<i64: 4, 256, 64>}, {pipeline_mode = #tpu.pipeline_mode<synchronous>, transform_indices = @transform_6, window_bounds = array<i64: 4, 64, 16>}, {transform_indices = @transform_7, window_bounds = array<i64: 1, 16, 16>}]} {
    %c0 = arith.constant 0 : index
    %c0_0 = arith.constant 0 : index
    %c0_1 = arith.constant 0 : index
    %0 = vector.load %arg1[%c0, %c0_0, %c0_1] : memref<1x3x256xf32, #tpu.memory_space<vmem>>, vector<1x3x256xf32>
    %1 = vector.shape_cast %0 : vector<1x3x256xf32> to vector<3x256xf32>
    %cst = arith.constant 0.000000e+00 : f32
    %2 = vector.broadcast %cst : f32 to vector<3x17xf32>
    %c0_2 = arith.constant 0 : index
    %c0_3 = arith.constant 0 : index
    %3 = vector.load %arg9[%c0_2, %c0_3] : memref<3x290xf32, #tpu.memory_space<vmem>>, vector<3x17xf32>
    tpu.vector_store %arg9[%c0_2, %c0_3], %2 {strides = array<i32>} : memref<3x290xf32, #tpu.memory_space<vmem>>, vector<3x17xf32>,
    %cst_4 = arith.constant 0.000000e+00 : f32
    %4 = vector.broadcast %cst_4 : f32 to vector<3x17xf32>
    %c0_5 = arith.constant 0 : index
    %c273 = arith.constant 273 : index
    %5 = vector.load %arg9[%c0_5, %c273] : memref<3x290xf32, #tpu.memory_space<vmem>>, vector<3x17xf32>
    tpu.vector_store %arg9[%c0_5, %c273], %4 {strides = array<i32>} : memref<3x290xf32, #tpu.memory_space<vmem>>, vector<3x17xf32>,
    %c0_6 = arith.constant 0 : index
    %c17 = arith.constant 17 : index
    %6 = vector.load %arg9[%c0_6, %c17] : memref<3x290xf32, #tpu.memory_space<vmem>>, vector<3x256xf32>
    tpu.vector_store %arg9[%c0_6, %c17], %1 {strides = array<i32>} : memref<3x290xf32, #tpu.memory_space<vmem>>, vector<3x256xf32>,
    %7 = tpu.iota {dimensions = array<i32: 1>} : vector<3x256xi32>
    %c16_i32 = arith.constant 16 : i32
    %c0_i32 = arith.constant 0 : i32
    %8 = arith.cmpi eq, %c16_i32, %c0_i32 : i32
    %c1_i32 = arith.constant 1 : i32
    %9 = arith.select %8, %c1_i32, %c16_i32 : i32
    %10 = vector.broadcast %9 : i32 to vector<3x256xi32>
    %11 = arith.remsi %7, %10 : vector<3x256xi32>
    %c0_i32_7 = arith.constant 0 : i32
    %12 = vector.broadcast %c0_i32_7 : i32 to vector<3x256xi32>
    %13 = arith.cmpi ne, %11, %12 : vector<3x256xi32>
    %c0_i32_8 = arith.constant 0 : i32
    %14 = vector.broadcast %c0_i32_8 : i32 to vector<3x256xi32>
    %15 = arith.cmpi slt, %11, %14 : vector<3x256xi32>
    %c0_i32_9 = arith.constant 0 : i32
    %16 = arith.cmpi slt, %9, %c0_i32_9 : i32
    %17 = vector.broadcast %16 : i1 to vector<3x256xi1>
    %18 = vector.broadcast %17 : vector<3x256xi1> to vector<3x256xi1>
    %19 = arith.xori %15, %18 : vector<3x256xi1>
    %20 = arith.andi %19, %13 : vector<3x256xi1>
    %21 = vector.broadcast %9 : i32 to vector<3x256xi32>
    %22 = arith.addi %11, %21 : vector<3x256xi32>
    %23 = arith.select %20, %22, %11 : vector<3x256xi1>, vector<3x256xi32>
    %c0_10 = arith.constant 0 : index
    %c0_11 = arith.constant 0 : index
    %24 = vector.load %arg9[%c0_10, %c0_11] : memref<3x290xf32, #tpu.memory_space<vmem>>, vector<3x256xf32>
    %c0_i32_12 = arith.constant 0 : i32
    %25 = vector.broadcast %c0_i32_12 : i32 to vector<3x256xi32>
    %26 = arith.cmpi sgt, %23, %25 : vector<3x256xi32>
    %cst_13 = arith.constant 0.000000e+00 : f32
    %27 = vector.broadcast %cst_13 : f32 to vector<3x256xf32>
    %28 = arith.select %26, %24, %27 : vector<3x256xi1>, vector<3x256xf32>
    %c0_14 = arith.constant 0 : index
    %c0_15 = arith.constant 0 : index
    %29 = vector.load %arg10[%c0_14, %c0_15] : memref<27x256xf32, #tpu.memory_space<vmem>>, vector<3x256xf32>
    tpu.vector_store %arg10[%c0_14, %c0_15], %28 {strides = array<i32>} : memref<27x256xf32, #tpu.memory_space<vmem>>, vector<3x256xf32>,
    %c0_16 = arith.constant 0 : index
    %c1 = arith.constant 1 : index
    %30 = vector.load %arg9[%c0_16, %c1] : memref<3x290xf32, #tpu.memory_space<vmem>>, vector<3x256xf32>
    %c3 = arith.constant 3 : index
    %c0_17 = arith.constant 0 : index
    %31 = vector.load %arg10[%c3, %c0_17] : memref<27x256xf32, #tpu.memory_space<vmem>>, vector<3x256xf32>
    tpu.vector_store %arg10[%c3, %c0_17], %30 {strides = array<i32>} : memref<27x256xf32, #tpu.memory_space<vmem>>, vector<3x256xf32>,
    %c0_18 = arith.constant 0 : index
    %c2 = arith.constant 2 : index
    %32 = vector.load %arg9[%c0_18, %c2] : memref<3x290xf32, #tpu.memory_space<vmem>>, vector<3x256xf32>
    %c15_i32 = arith.constant 15 : i32
    %33 = vector.broadcast %c15_i32 : i32 to vector<3x256xi32>
    %34 = arith.cmpi slt, %23, %33 : vector<3x256xi32>
    %cst_19 = arith.constant 0.000000e+00 : f32
    %35 = vector.broadcast %cst_19 : f32 to vector<3x256xf32>
    %36 = arith.select %34, %32, %35 : vector<3x256xi1>, vector<3x256xf32>
    %c6 = arith.constant 6 : index
    %c0_20 = arith.constant 0 : index
    %37 = vector.load %arg10[%c6, %c0_20] : memref<27x256xf32, #tpu.memory_space<vmem>>, vector<3x256xf32>
    tpu.vector_store %arg10[%c6, %c0_20], %36 {strides = array<i32>} : memref<27x256xf32, #tpu.memory_space<vmem>>, vector<3x256xf32>,
    %c0_21 = arith.constant 0 : index
    %c16 = arith.constant 16 : index
    %38 = vector.load %arg9[%c0_21, %c16] : memref<3x290xf32, #tpu.memory_space<vmem>>, vector<3x256xf32>
    %c0_i32_22 = arith.constant 0 : i32
    %39 = vector.broadcast %c0_i32_22 : i32 to vector<3x256xi32>
    %40 = arith.cmpi sgt, %23, %39 : vector<3x256xi32>
    %cst_23 = arith.constant 0.000000e+00 : f32
    %41 = vector.broadcast %cst_23 : f32 to vector<3x256xf32>
    %42 = arith.select %40, %38, %41 : vector<3x256xi1>, vector<3x256xf32>
    %c9 = arith.constant 9 : index
    %c0_24 = arith.constant 0 : index
    %43 = vector.load %arg10[%c9, %c0_24] : memref<27x256xf32, #tpu.memory_space<vmem>>, vector<3x256xf32>
    tpu.vector_store %arg10[%c9, %c0_24], %42 {strides = array<i32>} : memref<27x256xf32, #tpu.memory_space<vmem>>, vector<3x256xf32>,
    %c0_25 = arith.constant 0 : index
    %c17_26 = arith.constant 17 : index
    %44 = vector.load %arg9[%c0_25, %c17_26] : memref<3x290xf32, #tpu.memory_space<vmem>>, vector<3x256xf32>
    %c12 = arith.constant 12 : index
    %c0_27 = arith.constant 0 : index
    %45 = vector.load %arg10[%c12, %c0_27] : memref<27x256xf32, #tpu.memory_space<vmem>>, vector<3x256xf32>
    tpu.vector_store %arg10[%c12, %c0_27], %44 {strides = array<i32>} : memref<27x256xf32, #tpu.memory_space<vmem>>, vector<3x256xf32>,
    %c0_28 = arith.constant 0 : index
    %c18 = arith.constant 18 : index
    %46 = vector.load %arg9[%c0_28, %c18] : memref<3x290xf32, #tpu.memory_space<vmem>>, vector<3x256xf32>
    %c15_i32_29 = arith.constant 15 : i32
    %47 = vector.broadcast %c15_i32_29 : i32 to vector<3x256xi32>
    %48 = arith.cmpi slt, %23, %47 : vector<3x256xi32>
    %cst_30 = arith.constant 0.000000e+00 : f32
    %49 = vector.broadcast %cst_30 : f32 to vector<3x256xf32>
    %50 = arith.select %48, %46, %49 : vector<3x256xi1>, vector<3x256xf32>
    %c15 = arith.constant 15 : index
    %c0_31 = arith.constant 0 : index
    %51 = vector.load %arg10[%c15, %c0_31] : memref<27x256xf32, #tpu.memory_space<vmem>>, vector<3x256xf32>
    tpu.vector_store %arg10[%c15, %c0_31], %50 {strides = array<i32>} : memref<27x256xf32, #tpu.memory_space<vmem>>, vector<3x256xf32>,
    %c0_32 = arith.constant 0 : index
    %c32 = arith.constant 32 : index
    %52 = vector.load %arg9[%c0_32, %c32] : memref<3x290xf32, #tpu.memory_space<vmem>>, vector<3x256xf32>
    %c0_i32_33 = arith.constant 0 : i32
    %53 = vector.broadcast %c0_i32_33 : i32 to vector<3x256xi32>
    %54 = arith.cmpi sgt, %23, %53 : vector<3x256xi32>
    %cst_34 = arith.constant 0.000000e+00 : f32
    %55 = vector.broadcast %cst_34 : f32 to vector<3x256xf32>
    %56 = arith.select %54, %52, %55 : vector<3x256xi1>, vector<3x256xf32>
    %c18_35 = arith.constant 18 : index
    %c0_36 = arith.constant 0 : index
    %57 = vector.load %arg10[%c18_35, %c0_36] : memref<27x256xf32, #tpu.memory_space<vmem>>, vector<3x256xf32>
    tpu.vector_store %arg10[%c18_35, %c0_36], %56 {strides = array<i32>} : memref<27x256xf32, #tpu.memory_space<vmem>>, vector<3x256xf32>,
    %c0_37 = arith.constant 0 : index
    %c33 = arith.constant 33 : index
    %58 = vector.load %arg9[%c0_37, %c33] : memref<3x290xf32, #tpu.memory_space<vmem>>, vector<3x256xf32>
    %c21 = arith.constant 21 : index
    %c0_38 = arith.constant 0 : index
    %59 = vector.load %arg10[%c21, %c0_38] : memref<27x256xf32, #tpu.memory_space<vmem>>, vector<3x256xf32>
    tpu.vector_store %arg10[%c21, %c0_38], %58 {strides = array<i32>} : memref<27x256xf32, #tpu.memory_space<vmem>>, vector<3x256xf32>,
    %c0_39 = arith.constant 0 : index
    %c34 = arith.constant 34 : index
    %60 = vector.load %arg9[%c0_39, %c34] : memref<3x290xf32, #tpu.memory_space<vmem>>, vector<3x256xf32>
    %c15_i32_40 = arith.constant 15 : i32
    %61 = vector.broadcast %c15_i32_40 : i32 to vector<3x256xi32>
    %62 = arith.cmpi slt, %23, %61 : vector<3x256xi32>
    %cst_41 = arith.constant 0.000000e+00 : f32
    %63 = vector.broadcast %cst_41 : f32 to vector<3x256xf32>
    %64 = arith.select %62, %60, %63 : vector<3x256xi1>, vector<3x256xf32>
    %c24 = arith.constant 24 : index
    %c0_42 = arith.constant 0 : index
    %65 = vector.load %arg10[%c24, %c0_42] : memref<27x256xf32, #tpu.memory_space<vmem>>, vector<3x256xf32>
    tpu.vector_store %arg10[%c24, %c0_42], %64 {strides = array<i32>} : memref<27x256xf32, #tpu.memory_space<vmem>>, vector<3x256xf32>,
    %c0_43 = arith.constant 0 : index
    %c0_44 = arith.constant 0 : index
    %66 = vector.load %arg2[%c0_43, %c0_44] : memref<8x27xf32, #tpu.memory_space<vmem>>, vector<8x27xf32>
    %c0_45 = arith.constant 0 : index
    %c0_46 = arith.constant 0 : index
    %67 = vector.load %arg10[%c0_45, %c0_46] : memref<27x256xf32, #tpu.memory_space<vmem>>, vector<27x256xf32>
    %cst_47 = arith.constant dense<0.000000e+00> : vector<8x256xf32>
    %68 = tpu.matmul %66, %67, %cst_47 {dimension_numbers = #tpu.dot_dimension_numbers<[1], [0], [0], [1], [0, 0, 1, 1], [], []>} : vector<8x27xf32>, vector<27x256xf32>, vector<8x256xf32> -> vector<8x256xf32>
    %c0_48 = arith.constant 0 : index
    %c0_49 = arith.constant 0 : index
    %69 = vector.load %arg3[%c0_48, %c0_49] : memref<8x1xf32, #tpu.memory_space<vmem>>, vector<8x1xf32>
    %70 = vector.broadcast %69 : vector<8x1xf32> to vector<8x256xf32>
    %71 = arith.addf %68, %70 : vector<8x256xf32>
    %cst_50 = arith.constant 0.000000e+00 : f32
    %72 = vector.broadcast %cst_50 : f32 to vector<8x256xf32>
    %73 = arith.maximumf %71, %72 : vector<8x256xf32>
    %c0_51 = arith.constant 0 : index
    %c0_52 = arith.constant 0 : index
    %c0_53 = arith.constant 0 : index
    %74 = vector.load %arg6[%c0_51, %c0_52, %c0_53] : memref<4x256x64xf32, #tpu.memory_space<vmem>>, vector<1x256x64xf32>
    %75 = vector.shape_cast %74 : vector<1x256x64xf32> to vector<256x64xf32>
    %cst_54 = arith.constant dense<0.000000e+00> : vector<8x64xf32>
    %76 = tpu.matmul %73, %75, %cst_54 {dimension_numbers = #tpu.dot_dimension_numbers<[1], [0], [0], [1], [0, 0, 1, 1], [], []>} : vector<8x256xf32>, vector<256x64xf32>, vector<8x64xf32> -> vector<8x64xf32>
    %c1_55 = arith.constant 1 : index
    %c0_56 = arith.constant 0 : index
    %c0_57 = arith.constant 0 : index
    %77 = vector.load %arg6[%c1_55, %c0_56, %c0_57] : memref<4x256x64xf32, #tpu.memory_space<vmem>>, vector<1x256x64xf32>
    %78 = vector.shape_cast %77 : vector<1x256x64xf32> to vector<256x64xf32>
    %cst_58 = arith.constant dense<0.000000e+00> : vector<8x64xf32>
    %79 = tpu.matmul %73, %78, %cst_58 {dimension_numbers = #tpu.dot_dimension_numbers<[1], [0], [0], [1], [0, 0, 1, 1], [], []>} : vector<8x256xf32>, vector<256x64xf32>, vector<8x64xf32> -> vector<8x64xf32>
    %80 = arith.maximumf %76, %79 : vector<8x64xf32>
    %c2_59 = arith.constant 2 : index
    %c0_60 = arith.constant 0 : index
    %c0_61 = arith.constant 0 : index
    %81 = vector.load %arg6[%c2_59, %c0_60, %c0_61] : memref<4x256x64xf32, #tpu.memory_space<vmem>>, vector<1x256x64xf32>
    %82 = vector.shape_cast %81 : vector<1x256x64xf32> to vector<256x64xf32>
    %cst_62 = arith.constant dense<0.000000e+00> : vector<8x64xf32>
    %83 = tpu.matmul %73, %82, %cst_62 {dimension_numbers = #tpu.dot_dimension_numbers<[1], [0], [0], [1], [0, 0, 1, 1], [], []>} : vector<8x256xf32>, vector<256x64xf32>, vector<8x64xf32> -> vector<8x64xf32>
    %84 = arith.maximumf %80, %83 : vector<8x64xf32>
    %c3_63 = arith.constant 3 : index
    %c0_64 = arith.constant 0 : index
    %c0_65 = arith.constant 0 : index
    %85 = vector.load %arg6[%c3_63, %c0_64, %c0_65] : memref<4x256x64xf32, #tpu.memory_space<vmem>>, vector<1x256x64xf32>
    %86 = vector.shape_cast %85 : vector<1x256x64xf32> to vector<256x64xf32>
    %cst_66 = arith.constant dense<0.000000e+00> : vector<8x64xf32>
    %87 = tpu.matmul %73, %86, %cst_66 {dimension_numbers = #tpu.dot_dimension_numbers<[1], [0], [0], [1], [0, 0, 1, 1], [], []>} : vector<8x256xf32>, vector<256x64xf32>, vector<8x64xf32> -> vector<8x64xf32>
    %88 = arith.maximumf %84, %87 : vector<8x64xf32>
    %cst_67 = arith.constant 0.000000e+00 : f32
    %89 = vector.broadcast %cst_67 : f32 to vector<8x9xf32>
    %c0_68 = arith.constant 0 : index
    %c0_69 = arith.constant 0 : index
    %90 = vector.load %arg11[%c0_68, %c0_69] : memref<8x82xf32, #tpu.memory_space<vmem>>, vector<8x9xf32>
    tpu.vector_store %arg11[%c0_68, %c0_69], %89 {strides = array<i32>} : memref<8x82xf32, #tpu.memory_space<vmem>>, vector<8x9xf32>,
    %cst_70 = arith.constant 0.000000e+00 : f32
    %91 = vector.broadcast %cst_70 : f32 to vector<8x9xf32>
    %c0_71 = arith.constant 0 : index
    %c73 = arith.constant 73 : index
    %92 = vector.load %arg11[%c0_71, %c73] : memref<8x82xf32, #tpu.memory_space<vmem>>, vector<8x9xf32>
    tpu.vector_store %arg11[%c0_71, %c73], %91 {strides = array<i32>} : memref<8x82xf32, #tpu.memory_space<vmem>>, vector<8x9xf32>,
    %c0_72 = arith.constant 0 : index
    %c9_73 = arith.constant 9 : index
    %93 = vector.load %arg11[%c0_72, %c9_73] : memref<8x82xf32, #tpu.memory_space<vmem>>, vector<8x64xf32>
    tpu.vector_store %arg11[%c0_72, %c9_73], %88 {strides = array<i32>} : memref<8x82xf32, #tpu.memory_space<vmem>>, vector<8x64xf32>,
    %94 = tpu.iota {dimensions = array<i32: 1>} : vector<8x64xi32>
    %c8_i32 = arith.constant 8 : i32
    %c0_i32_74 = arith.constant 0 : i32
    %95 = arith.cmpi eq, %c8_i32, %c0_i32_74 : i32
    %c1_i32_75 = arith.constant 1 : i32
    %96 = arith.select %95, %c1_i32_75, %c8_i32 : i32
    %97 = vector.broadcast %96 : i32 to vector<8x64xi32>
    %98 = arith.remsi %94, %97 : vector<8x64xi32>
    %c0_i32_76 = arith.constant 0 : i32
    %99 = vector.broadcast %c0_i32_76 : i32 to vector<8x64xi32>
    %100 = arith.cmpi ne, %98, %99 : vector<8x64xi32>
    %c0_i32_77 = arith.constant 0 : i32
    %101 = vector.broadcast %c0_i32_77 : i32 to vector<8x64xi32>
    %102 = arith.cmpi slt, %98, %101 : vector<8x64xi32>
    %c0_i32_78 = arith.constant 0 : i32
    %103 = arith.cmpi slt, %96, %c0_i32_78 : i32
    %104 = vector.broadcast %103 : i1 to vector<8x64xi1>
    %105 = vector.broadcast %104 : vector<8x64xi1> to vector<8x64xi1>
    %106 = arith.xori %102, %105 : vector<8x64xi1>
    %107 = arith.andi %106, %100 : vector<8x64xi1>
    %108 = vector.broadcast %96 : i32 to vector<8x64xi32>
    %109 = arith.addi %98, %108 : vector<8x64xi32>
    %110 = arith.select %107, %109, %98 : vector<8x64xi1>, vector<8x64xi32>
    %c0_79 = arith.constant 0 : index
    %c0_80 = arith.constant 0 : index
    %111 = vector.load %arg11[%c0_79, %c0_80] : memref<8x82xf32, #tpu.memory_space<vmem>>, vector<8x64xf32>
    %c0_i32_81 = arith.constant 0 : i32
    %112 = vector.broadcast %c0_i32_81 : i32 to vector<8x64xi32>
    %113 = arith.cmpi sgt, %110, %112 : vector<8x64xi32>
    %cst_82 = arith.constant 0.000000e+00 : f32
    %114 = vector.broadcast %cst_82 : f32 to vector<8x64xf32>
    %115 = arith.select %113, %111, %114 : vector<8x64xi1>, vector<8x64xf32>
    %c0_83 = arith.constant 0 : index
    %c0_84 = arith.constant 0 : index
    %116 = vector.load %arg12[%c0_83, %c0_84] : memref<72x64xf32, #tpu.memory_space<vmem>>, vector<8x64xf32>
    tpu.vector_store %arg12[%c0_83, %c0_84], %115 {strides = array<i32>} : memref<72x64xf32, #tpu.memory_space<vmem>>, vector<8x64xf32>,
    %c0_85 = arith.constant 0 : index
    %c1_86 = arith.constant 1 : index
    %117 = vector.load %arg11[%c0_85, %c1_86] : memref<8x82xf32, #tpu.memory_space<vmem>>, vector<8x64xf32>
    %c8 = arith.constant 8 : index
    %c0_87 = arith.constant 0 : index
    %118 = vector.load %arg12[%c8, %c0_87] : memref<72x64xf32, #tpu.memory_space<vmem>>, vector<8x64xf32>
    tpu.vector_store %arg12[%c8, %c0_87], %117 {strides = array<i32>} : memref<72x64xf32, #tpu.memory_space<vmem>>, vector<8x64xf32>,
    %c0_88 = arith.constant 0 : index
    %c2_89 = arith.constant 2 : index
    %119 = vector.load %arg11[%c0_88, %c2_89] : memref<8x82xf32, #tpu.memory_space<vmem>>, vector<8x64xf32>
    %c7_i32 = arith.constant 7 : i32
    %120 = vector.broadcast %c7_i32 : i32 to vector<8x64xi32>
    %121 = arith.cmpi slt, %110, %120 : vector<8x64xi32>
    %cst_90 = arith.constant 0.000000e+00 : f32
    %122 = vector.broadcast %cst_90 : f32 to vector<8x64xf32>
    %123 = arith.select %121, %119, %122 : vector<8x64xi1>, vector<8x64xf32>
    %c16_91 = arith.constant 16 : index
    %c0_92 = arith.constant 0 : index
    %124 = vector.load %arg12[%c16_91, %c0_92] : memref<72x64xf32, #tpu.memory_space<vmem>>, vector<8x64xf32>
    tpu.vector_store %arg12[%c16_91, %c0_92], %123 {strides = array<i32>} : memref<72x64xf32, #tpu.memory_space<vmem>>, vector<8x64xf32>,
    %c0_93 = arith.constant 0 : index
    %c8_94 = arith.constant 8 : index
    %125 = vector.load %arg11[%c0_93, %c8_94] : memref<8x82xf32, #tpu.memory_space<vmem>>, vector<8x64xf32>
    %c0_i32_95 = arith.constant 0 : i32
    %126 = vector.broadcast %c0_i32_95 : i32 to vector<8x64xi32>
    %127 = arith.cmpi sgt, %110, %126 : vector<8x64xi32>
    %cst_96 = arith.constant 0.000000e+00 : f32
    %128 = vector.broadcast %cst_96 : f32 to vector<8x64xf32>
    %129 = arith.select %127, %125, %128 : vector<8x64xi1>, vector<8x64xf32>
    %c24_97 = arith.constant 24 : index
    %c0_98 = arith.constant 0 : index
    %130 = vector.load %arg12[%c24_97, %c0_98] : memref<72x64xf32, #tpu.memory_space<vmem>>, vector<8x64xf32>
    tpu.vector_store %arg12[%c24_97, %c0_98], %129 {strides = array<i32>} : memref<72x64xf32, #tpu.memory_space<vmem>>, vector<8x64xf32>,
    %c0_99 = arith.constant 0 : index
    %c9_100 = arith.constant 9 : index
    %131 = vector.load %arg11[%c0_99, %c9_100] : memref<8x82xf32, #tpu.memory_space<vmem>>, vector<8x64xf32>
    %c32_101 = arith.constant 32 : index
    %c0_102 = arith.constant 0 : index
    %132 = vector.load %arg12[%c32_101, %c0_102] : memref<72x64xf32, #tpu.memory_space<vmem>>, vector<8x64xf32>
    tpu.vector_store %arg12[%c32_101, %c0_102], %131 {strides = array<i32>} : memref<72x64xf32, #tpu.memory_space<vmem>>, vector<8x64xf32>,
    %c0_103 = arith.constant 0 : index
    %c10 = arith.constant 10 : index
    %133 = vector.load %arg11[%c0_103, %c10] : memref<8x82xf32, #tpu.memory_space<vmem>>, vector<8x64xf32>
    %c7_i32_104 = arith.constant 7 : i32
    %134 = vector.broadcast %c7_i32_104 : i32 to vector<8x64xi32>
    %135 = arith.cmpi slt, %110, %134 : vector<8x64xi32>
    %cst_105 = arith.constant 0.000000e+00 : f32
    %136 = vector.broadcast %cst_105 : f32 to vector<8x64xf32>
    %137 = arith.select %135, %133, %136 : vector<8x64xi1>, vector<8x64xf32>
    %c40 = arith.constant 40 : index
    %c0_106 = arith.constant 0 : index
    %138 = vector.load %arg12[%c40, %c0_106] : memref<72x64xf32, #tpu.memory_space<vmem>>, vector<8x64xf32>
    tpu.vector_store %arg12[%c40, %c0_106], %137 {strides = array<i32>} : memref<72x64xf32, #tpu.memory_space<vmem>>, vector<8x64xf32>,
    %c0_107 = arith.constant 0 : index
    %c16_108 = arith.constant 16 : index
    %139 = vector.load %arg11[%c0_107, %c16_108] : memref<8x82xf32, #tpu.memory_space<vmem>>, vector<8x64xf32>
    %c0_i32_109 = arith.constant 0 : i32
    %140 = vector.broadcast %c0_i32_109 : i32 to vector<8x64xi32>
    %141 = arith.cmpi sgt, %110, %140 : vector<8x64xi32>
    %cst_110 = arith.constant 0.000000e+00 : f32
    %142 = vector.broadcast %cst_110 : f32 to vector<8x64xf32>
    %143 = arith.select %141, %139, %142 : vector<8x64xi1>, vector<8x64xf32>
    %c48 = arith.constant 48 : index
    %c0_111 = arith.constant 0 : index
    %144 = vector.load %arg12[%c48, %c0_111] : memref<72x64xf32, #tpu.memory_space<vmem>>, vector<8x64xf32>
    tpu.vector_store %arg12[%c48, %c0_111], %143 {strides = array<i32>} : memref<72x64xf32, #tpu.memory_space<vmem>>, vector<8x64xf32>,
    %c0_112 = arith.constant 0 : index
    %c17_113 = arith.constant 17 : index
    %145 = vector.load %arg11[%c0_112, %c17_113] : memref<8x82xf32, #tpu.memory_space<vmem>>, vector<8x64xf32>
    %c56 = arith.constant 56 : index
    %c0_114 = arith.constant 0 : index
    %146 = vector.load %arg12[%c56, %c0_114] : memref<72x64xf32, #tpu.memory_space<vmem>>, vector<8x64xf32>
    tpu.vector_store %arg12[%c56, %c0_114], %145 {strides = array<i32>} : memref<72x64xf32, #tpu.memory_space<vmem>>, vector<8x64xf32>,
    %c0_115 = arith.constant 0 : index
    %c18_116 = arith.constant 18 : index
    %147 = vector.load %arg11[%c0_115, %c18_116] : memref<8x82xf32, #tpu.memory_space<vmem>>, vector<8x64xf32>
    %c7_i32_117 = arith.constant 7 : i32
    %148 = vector.broadcast %c7_i32_117 : i32 to vector<8x64xi32>
    %149 = arith.cmpi slt, %110, %148 : vector<8x64xi32>
    %cst_118 = arith.constant 0.000000e+00 : f32
    %150 = vector.broadcast %cst_118 : f32 to vector<8x64xf32>
    %151 = arith.select %149, %147, %150 : vector<8x64xi1>, vector<8x64xf32>
    %c64 = arith.constant 64 : index
    %c0_119 = arith.constant 0 : index
    %152 = vector.load %arg12[%c64, %c0_119] : memref<72x64xf32, #tpu.memory_space<vmem>>, vector<8x64xf32>
    tpu.vector_store %arg12[%c64, %c0_119], %151 {strides = array<i32>} : memref<72x64xf32, #tpu.memory_space<vmem>>, vector<8x64xf32>,
    %c0_120 = arith.constant 0 : index
    %c0_121 = arith.constant 0 : index
    %153 = vector.load %arg4[%c0_120, %c0_121] : memref<16x72xf32, #tpu.memory_space<vmem>>, vector<16x72xf32>
    %c0_122 = arith.constant 0 : index
    %c0_123 = arith.constant 0 : index
    %154 = vector.load %arg12[%c0_122, %c0_123] : memref<72x64xf32, #tpu.memory_space<vmem>>, vector<72x64xf32>
    %cst_124 = arith.constant dense<0.000000e+00> : vector<16x64xf32>
    %155 = tpu.matmul %153, %154, %cst_124 {dimension_numbers = #tpu.dot_dimension_numbers<[1], [0], [0], [1], [0, 0, 1, 1], [], []>} : vector<16x72xf32>, vector<72x64xf32>, vector<16x64xf32> -> vector<16x64xf32>
    %c0_125 = arith.constant 0 : index
    %c0_126 = arith.constant 0 : index
    %156 = vector.load %arg5[%c0_125, %c0_126] : memref<16x1xf32, #tpu.memory_space<vmem>>, vector<16x1xf32>
    %157 = vector.broadcast %156 : vector<16x1xf32> to vector<16x64xf32>
    %158 = arith.addf %155, %157 : vector<16x64xf32>
    %cst_127 = arith.constant 0.000000e+00 : f32
    %159 = vector.broadcast %cst_127 : f32 to vector<16x64xf32>
    %160 = arith.maximumf %158, %159 : vector<16x64xf32>
    %c0_128 = arith.constant 0 : index
    %c0_129 = arith.constant 0 : index
    %c0_130 = arith.constant 0 : index
    %161 = vector.load %arg7[%c0_128, %c0_129, %c0_130] : memref<4x64x16xf32, #tpu.memory_space<vmem>>, vector<1x64x16xf32>
    %162 = vector.shape_cast %161 : vector<1x64x16xf32> to vector<64x16xf32>
    %cst_131 = arith.constant dense<0.000000e+00> : vector<16x16xf32>
    %163 = tpu.matmul %160, %162, %cst_131 {dimension_numbers = #tpu.dot_dimension_numbers<[1], [0], [0], [1], [0, 0, 1, 1], [], []>} : vector<16x64xf32>, vector<64x16xf32>, vector<16x16xf32> -> vector<16x16xf32>
    %c1_132 = arith.constant 1 : index
    %c0_133 = arith.constant 0 : index
    %c0_134 = arith.constant 0 : index
    %164 = vector.load %arg7[%c1_132, %c0_133, %c0_134] : memref<4x64x16xf32, #tpu.memory_space<vmem>>, vector<1x64x16xf32>
    %165 = vector.shape_cast %164 : vector<1x64x16xf32> to vector<64x16xf32>
    %cst_135 = arith.constant dense<0.000000e+00> : vector<16x16xf32>
    %166 = tpu.matmul %160, %165, %cst_135 {dimension_numbers = #tpu.dot_dimension_numbers<[1], [0], [0], [1], [0, 0, 1, 1], [], []>} : vector<16x64xf32>, vector<64x16xf32>, vector<16x16xf32> -> vector<16x16xf32>
    %167 = arith.maximumf %163, %166 : vector<16x16xf32>
    %c2_136 = arith.constant 2 : index
    %c0_137 = arith.constant 0 : index
    %c0_138 = arith.constant 0 : index
    %168 = vector.load %arg7[%c2_136, %c0_137, %c0_138] : memref<4x64x16xf32, #tpu.memory_space<vmem>>, vector<1x64x16xf32>
    %169 = vector.shape_cast %168 : vector<1x64x16xf32> to vector<64x16xf32>
    %cst_139 = arith.constant dense<0.000000e+00> : vector<16x16xf32>
    %170 = tpu.matmul %160, %169, %cst_139 {dimension_numbers = #tpu.dot_dimension_numbers<[1], [0], [0], [1], [0, 0, 1, 1], [], []>} : vector<16x64xf32>, vector<64x16xf32>, vector<16x16xf32> -> vector<16x16xf32>
    %171 = arith.maximumf %167, %170 : vector<16x16xf32>
    %c3_140 = arith.constant 3 : index
    %c0_141 = arith.constant 0 : index
    %c0_142 = arith.constant 0 : index
    %172 = vector.load %arg7[%c3_140, %c0_141, %c0_142] : memref<4x64x16xf32, #tpu.memory_space<vmem>>, vector<1x64x16xf32>
    %173 = vector.shape_cast %172 : vector<1x64x16xf32> to vector<64x16xf32>
    %cst_143 = arith.constant dense<0.000000e+00> : vector<16x16xf32>
    %174 = tpu.matmul %160, %173, %cst_143 {dimension_numbers = #tpu.dot_dimension_numbers<[1], [0], [0], [1], [0, 0, 1, 1], [], []>} : vector<16x64xf32>, vector<64x16xf32>, vector<16x16xf32> -> vector<16x16xf32>
    %175 = arith.maximumf %171, %174 : vector<16x16xf32>
    %c0_144 = arith.constant 0 : index
    %c0_145 = arith.constant 0 : index
    %c0_146 = arith.constant 0 : index
    %176 = vector.load %arg8[%c0_144, %c0_145, %c0_146] : memref<1x16x16xf32, #tpu.memory_space<vmem>>, vector<1x16x16xf32>
    %177 = vector.shape_cast %176 : vector<1x16x16xf32> to vector<16x16xf32>
    %178 = vector.shape_cast %175 : vector<16x16xf32> to vector<1x16x16xf32>
    tpu.vector_store %arg8[%c0_144, %c0_145, %c0_146], %178 {strides = array<i32>} : memref<1x16x16xf32, #tpu.memory_space<vmem>>, vector<1x16x16xf32>,
    return
  }
  func.func @transform_0(%arg0: i32) -> (i32, i32, i32) {
    %c0_i32 = arith.constant 0 : i32
    %c0_i32_0 = arith.constant 0 : i32
    %c0_i32_1 = arith.constant 0 : i32
    return %arg0, %c0_i32, %c0_i32_0 : i32, i32, i32
  }
  func.func @transform_1(%arg0: i32) -> (i32, i32) {
    %c0_i32 = arith.constant 0 : i32
    %c0_i32_0 = arith.constant 0 : i32
    %c0_i32_1 = arith.constant 0 : i32
    return %c0_i32, %c0_i32_0 : i32, i32
  }
  func.func @transform_2(%arg0: i32) -> (i32, i32) {
    %c0_i32 = arith.constant 0 : i32
    %c0_i32_0 = arith.constant 0 : i32
    %c0_i32_1 = arith.constant 0 : i32
    return %c0_i32, %c0_i32_0 : i32, i32
  }
  func.func @transform_3(%arg0: i32) -> (i32, i32) {
    %c0_i32 = arith.constant 0 : i32
    %c0_i32_0 = arith.constant 0 : i32
    %c0_i32_1 = arith.constant 0 : i32
    return %c0_i32, %c0_i32_0 : i32, i32
  }
  func.func @transform_4(%arg0: i32) -> (i32, i32) {
    %c0_i32 = arith.constant 0 : i32
    %c0_i32_0 = arith.constant 0 : i32
    %c0_i32_1 = arith.constant 0 : i32
    return %c0_i32, %c0_i32_0 : i32, i32
  }
  func.func @transform_5(%arg0: i32) -> (i32, i32, i32) {
    %c0_i32 = arith.constant 0 : i32
    %c0_i32_0 = arith.constant 0 : i32
    %c0_i32_1 = arith.constant 0 : i32
    %c0_i32_2 = arith.constant 0 : i32
    return %c0_i32, %c0_i32_0, %c0_i32_1 : i32, i32, i32
  }
  func.func @transform_6(%arg0: i32) -> (i32, i32, i32) {
    %c0_i32 = arith.constant 0 : i32
    %c0_i32_0 = arith.constant 0 : i32
    %c0_i32_1 = arith.constant 0 : i32
    %c0_i32_2 = arith.constant 0 : i32
    return %c0_i32, %c0_i32_0, %c0_i32_1 : i32, i32, i32
  }
  func.func @transform_7(%arg0: i32) -> (i32, i32, i32) {
    %c0_i32 = arith.constant 0 : i32
    %c0_i32_0 = arith.constant 0 : i32
    %c0_i32_1 = arith.constant 0 : i32
    return %arg0, %c0_i32, %c0_i32_0 : i32, i32, i32
  }
}

</mosaic_0001>

<bundles_post_ra>
// kernel: layer2_forward.1
= control target key start
LH: loop header
LB: loop body
LE: loop exit
PB: predicated region body
PF: predicated region fallthrough
CT: control target
= control target key end

     0   :  { %12 = vsyncpa [#allocation7], 0  ;;  %s2364_s24 = smov 0   ;;  %s2678_s0 = inlined_call_operand.vmem [shape: f32[2,3,256], index: 0, kind: input, shape index: {}]   ;;  %s2679_s1 = inlined_call_operand.vmem [shape: f32[8,27], index: 1, kind: input, shape index: {}]   ;;  %s2680_s2 = inlined_call_operand.vmem [shape: f32[8,1], index: 2, kind: input, shape index: {}]   ;;  %s2681_s3 = inlined_call_operand.vmem [shape: f32[16,72], index: 3, kind: input, shape index: {}]   ;;  %s2682_s4 = inlined_call_operand.vmem [shape: f32[16,1], index: 4, kind: input, shape index: {}]   ;;  %s2683_s5 = inlined_call_operand.hbm [shape: f32[4,256,64], index: 5, kind: input, shape index: {}]   ;;  %s2684_s6 = inlined_call_operand.vmem [shape: f32[4,64,16], index: 6, kind: input, shape index: {}]   ;;  %s2685_s7 = inlined_call_operand.vmem [shape: f32[2,16,16], index: 7, kind: output, shape index: {}]  }
   0x1 LB: > { %s2370_s25 = sadd.s32 4294967295, %s2303_s24   ;;  %p1660_p0 = scmp.ge.s32.totalorder %s2303_s24, 1  ;;  %s2303_s24 = sphi %s2364_s24, %s18_s24  }
   0x2   : > { %p201_p1 = scmp.lt.s32.totalorder %s2303_s24, 3  ;;  %s2305_s26 = smov [#allocation6]  }
   0x3   : > { %s225_s27 = sshll.u32 %s2305_s26, 4  ;;  %p2686_p3 = scmp.eq.s32.totalorder %s2370_s25, 0  ;;  %s226_s27 = int_to_ptr.vmem [resolvable:$true] %s225_s27 }
   0x4   : > { %p2374_p2 = pnand %p1660_p0, %p201_p1  ;;  %s2265_s9 = scalar_lea.hbm %s2683_s5, 16384 }
   0x5   : > { %p2266_p6 = scmp.ne.s32.totalorder %s2683_s5, %s2265_s9  ;;  %p2272_p10 = scmp.lt.u32.totalorder %s2265_s9, %s2683_s5 }
   0x6   : > { %s2688_s28 = scalar_select %p2374_p2, 1, 0 }
   0x7   : > { %p2220_p4 = pneg %p2374_p2 }
   0x9   : > { %p2383_p5 = pnand %p2686_p3, %p2220_p4 }
   0xb   : > { %p2267_p7 = pneg %p2383_p5 }
   0xd   : > { %p2268_p8 = pnand %p2267_p7, %p2266_p6 }
   0xf   : > { %p2269_p9 = pneg %p2268_p8 }
  0x11   : > { %p2274_p11 = pnand %p2272_p10, %p2269_p9 }
  0x13   : > { %2277 = shalt.err (!%p2274_p11)
}
  0x14   : > { %s2278_s14 = scalar_lea.vmem %s226_s27, 16384  ;;  %p2286_p1 = scmp.lt.s32.totalorder %s226_s27, %s226_s27 }
  0x15   : > { %p2279_p12 = scmp.ne.s32.totalorder %s226_s27, %s2278_s14  ;;  %p2287_p4 = scmp.lt.s32.totalorder %s2278_s14, %s2278_s14 }
  0x17   : > { %p2281_p13 = pnand %p2279_p12, %p2267_p7  ;;  %p2288_p3 = por %p2287_p4, %p2286_p1 }
  0x19   : > { %p2282_p0 = pneg %p2281_p13 }
  0x1b   : > { %p2289_p2 = pnand %p2288_p3, %p2282_p0 }
  0x1d   : > { %2292 = shalt.err (!%p2289_p2)
}
  0x1e   : > { %s2306_s15 = smov 128   ;;  %s2307_s16 = smov 8  }
  0x1f   : > { %2223 = dma.hbm_to_vmem [thread:$0]  (!%p2383_p5), %s2683_s5, 16384, %s226_s27, [#allocation7], %s2306_s15, %s2306_s15, %s2307_s16  }
  0x20   : > { %p2690_p6 = scmp.ne.s32.totalorder %s2688_s28, 0 }
  0x21   : > { %p2691_p8 = scmp.eq.s32.totalorder (!%p2690_p6), %s2370_s25, 0 }
  0x22   : > { %252 = sbr.rel (%p2690_p6) target bundleno = 1536 (0x600), region = 48 }
  0x29   : > { %2298 = dma.done.wait (%p2691_p8), [#allocation7], 16384   ;;  %p2692_p7 = pmov %p2691_p8 }
  0x2a   : > { %p284_p2 = scmp.lt.s32.totalorder %s2370_s25, 1  ;;  %vm295_vm0 = vcmask 133120   ;;  %v2308_v0 = vmov 0.0   ;;  %vm297_vm1 = vcmask 272520   ;;  %s2309_s23 = smov 17   ;;  %vm307_vm2 = vcmask 1042568  }
  0x2b   : > { %2300 = vsyncadd (%p2692_p7), [#allocation7], 4294950912  ;;  %296 = vst.msk [vmem:[#allocation2] sm:$0x7] %vm295_vm0, %v2308_v0  ;;  %630 = vmatprep.mubr.f32.mxu0 %v2308_v0  ;;  %vm308_vm3 = vcmask 1046532   ;;  %vm303_vm4 = vcmask 138240   ;;  %v312_v3 = vlaneseq }
  0x2c   : > { %s2706_s25 = smov (!%p284_p2, %s2370_s25), 1  ;;  %298 = vst.msk [vmem:[#allocation2 + $0x8] sm:$0x7] %vm297_vm1, %v2308_v0  ;;  %vm309_vm5 = vmor %vm308_vm3, %vm307_vm2  ;;  %s2310_s26 = smov 112   ;;  %v549_v46 = vld [vmem:[%s2680_s2] sm:$0xff]  ;;  %v2318_v49 = vmov 0  }
  0x2d   : > { %s1708_s19 = sshll.u32 %s2706_s25, 3  ;;  %v2422_v6 = vand.u32 127, %v312_v3  ;;  %s2311_s27 = smov 126   ;;  %v655_v47 = vld [vmem:[#allocation6 + $0x80] sm:$0xff]  ;;  %v656_v48 = vld [vmem:[#allocation6 + $0x88] sm:$0xff]  ;;  %2253 = vset.pattern.permute.xlu1 %v2318_v49  ;;  %2254 = vset.pattern.permute.xlu0 %v2318_v49  ;;  %v657_v54 = vld [vmem:[#allocation6 + $0x90] sm:$0xff] }
  0x2e   : > { %s288_s22 = scalar_lea.vmem %s2678_s0, %s1708_s19  ;;  %s2312_s28 = smov 110   ;;  %v2008_v50 = vpack.c.bf16 %v656_v48, %v655_v47  ;;  %v639_v51 = vld [vmem:[#allocation6] sm:$0xff]  ;;  %v640_v52 = vld [vmem:[#allocation6 + $0x8] sm:$0xff]  ;;  %v658_v55 = vld [vmem:[#allocation6 + $0x98] sm:$0xff]  ;;  %vm438_vm8 = vcmask 908288   ;;  %vm411_vm9 = vcmask 916480  }
  0x2f   : > { %v294_v1 = vld [vmem:[%s288_s22] sm:$0x77]  ;;  %v2425_v7 = vadd.s32 128, %v2422_v6  ;;  %v319_v10 = vand.u32 15, %v2422_v6  ;;  %s2313_s29 = smov 96   ;;  %s2314_s30 = smov 94   ;;  %v2010_v53 = vpack.c.bf16 %v640_v52, %v639_v51  ;;  %v2012_v56 = vpack.c.bf16 %v658_v55, %v657_v54 }
  0x30   : > { %300 = vrot.lane.b32.xlu0 %v294_v1, %s2309_s23  ;;  %s2315_s8 = smov 111   ;;  %s2316_s9 = smov 127   ;;  %2009 = vmatprep.subr.bf16.mxu1 %v2008_v50  ;;  %v641_v57 = vld [vmem:[#allocation6 + $0x10] sm:$0xff]  ;;  %v642_v58 = vld [vmem:[#allocation6 + $0x18] sm:$0xff]  ;;  %v659_v60 = vld [vmem:[#allocation6 + $0xa0] sm:$0xff]  ;;  %vm383_vm10 = vcmask 1031168  }
  0x31   : > { %v326_v11 = vand.u32 15, %v2425_v7  ;;  %vm2435_vm6 = vcmp.gt.s32.totalorder %v319_v10, 0  ;;  %s2317_s10 = smov 95   ;;  %2011 = vmatpush3.bf16.msra.mxu1 %v2010_v53  ;;  %v2014_v59 = vpack.c.bf16 %v642_v58, %v641_v57  ;;  %v660_v61 = vld [vmem:[#allocation6 + $0xa8] sm:$0xff]  ;;  %v643_v63 = vld [vmem:[#allocation6 + $0x20] sm:$0xff]  ;;  %v661_v3 = vld [vmem:[#allocation6 + $0xb0] sm:$0xff] }
  0x32   : > { %2013 = vmatprep.subr.bf16.mxu1 %v2012_v56  ;;  %v2016_v62 = vpack.c.bf16 %v660_v61, %v659_v60  ;;  %v644_v1 = vld [vmem:[#allocation6 + $0x28] sm:$0xff]  ;;  %vm2472_vm11 = vcmp.lt.s32.totalorder %v319_v10, 15  ;;  %vm456_vm13 = vcmask 900096   ;;  %vm484_vm14 = vcmask 785408   ;;  %s2320_s15 = smov 9   ;;  %s2321_s16 = smov 118  }
  0x33   : > { %vm2441_vm7 = vcmp.gt.s32.totalorder %v326_v11, 0  ;;  %vm2478_vm12 = vcmp.lt.s32.totalorder %v326_v11, 15  ;;  %vm531_vm15 = vcmask 769024   ;;  %vm513_vm1 = vcmask 777216   ;;  %s2322_s17 = smov 120   ;;  %s2323_s18 = smov 119  }
  0x34   : > { %vm559_vm2 = vcmask 1042432   ;;  %vm2319_vm3 = vmmov 1  }
  0x35   : > { %2015 = vmatpush3.bf16.msra.mxu1 %v2014_v59 }
  0x36   : > { %2017 = vmatprep.subr.bf16.mxu1 %v2016_v62 }
  0xa2   : > { %v301_v2 = vpop.permute.xlu0 %300 }
  0xa3   : > { %v302_v4 = vrot.slane %v301_v2, 4 }
  0xa5   : > { %v304_v5 = vsel %vm303_vm4, %v302_v4, %v301_v2  ;;  %311 = vst.msk [vmem:[#allocation2 + $0x8] sm:$0x7] %vm295_vm0, %v302_v4  ;;  %v2018_v2 = vpack.c.bf16 %v644_v1, %v643_v63  ;;  %v662_v4 = vld [vmem:[#allocation6 + $0xb8] sm:$0xff]  ;;  %vm363_vm0 = vcmask 1039360   ;;  %vm2003_vm4 = vmpackc.low %vm559_vm2, %vm2319_vm3 }
  0xa6   : > { %310 = vst.msk [vmem:[#allocation2] sm:$0x77] %vm309_vm5, %v304_v5  ;;  %v2020_v5 = vpack.c.bf16 %v662_v4, %v661_v3  ;;  %vm555_vm5 = vcmask 220160  }
  0xa7   : > { %2019 = vmatpush3.bf16.msra.mxu1 %v2018_v2 }
  0xa8   : > { %2021 = vmatprep.subr.bf16.mxu1 %v2020_v5 }
  0xac   : > { %v401_v8 = vld [vmem:[#allocation2 + $0x8] sm:$0x7] }
  0xad   : > { %v371_v9 = vld [vmem:[#allocation2 + $0x8] sm:$0x7]  ;;  %409 = vrot.lane.b32.xlu0 %v401_v8, %s2310_s26  ;;  %v339_v16 = vld [vmem:[#allocation2] sm:$0x77]  ;;  %v645_v8 = vld [vmem:[#allocation6 + $0x30] sm:$0xff] }
  0xae   : > { %381 = vrot.lane.b32.xlu1 %v371_v9, %s2311_s27  ;;  %v446_v12 = vld [vmem:[#allocation2 + $0x8] sm:$0x7]  ;;  %v343_v17 = vcombine.high %v339_v16, %v339_v16  ;;  %v370_v19 = vld [vmem:[#allocation2] sm:$0x77]  ;;  %v345_v20 = vsel %vm2435_vm6, %v339_v16, 0.0  ;;  %v646_v9 = vld [vmem:[#allocation6 + $0x38] sm:$0xff] }
  0xaf   : > { %v474_v13 = vld [vmem:[#allocation2 + $0x8] sm:$0x7]  ;;  %347 = vst [vmem:[#allocation3] sm:$0x7] %v345_v20  ;;  %v400_v22 = vld [vmem:[#allocation2] sm:$0x77]  ;;  %v376_v29 = vcombine.high %v370_v19, %v370_v19 }
  0xb0   : > { %v521_v18 = vld [vmem:[#allocation2 + $0x8] sm:$0x7]  ;;  %v346_v21 = vsel %vm2441_vm7, %v343_v17, 0.0  ;;  %v445_v23 = vld [vmem:[#allocation2] sm:$0x77]  ;;  %v404_v30 = vcombine.high %v400_v22, %v400_v22 }
  0xb1   : > { %454 = vrot.lane.b32.xlu0 %v446_v12, %s2312_s28  ;;  %348 = vst [vmem:[#allocation3 + $0x8] sm:$0x7] %v346_v21  ;;  %v350_v24 = vld [vmem:[#allocation2 + $0x8] sm:$0x7]  ;;  %v426_v26 = vld [vmem:[#allocation2] sm:$0x77]  ;;  %v449_v32 = vcombine.high %v445_v23, %v445_v23  ;;  %v2022_v12 = vpack.c.bf16 %v646_v9, %v645_v8 }
  0xb2   : > { %482 = vrot.lane.b32.xlu1 %v474_v13, %s2313_s29  ;;  %v356_v25 = vrot.slane %v350_v24, 5  ;;  %v2260_v27 = vld [vmem:[#allocation2 + $0x8] ss:$0 sps:$4 sm:$0x77]   ;;  %v473_v28 = vld [vmem:[#allocation2] sm:$0x77]  ;;  %v430_v34 = vcombine.low %v426_v26, %v426_v26 }
  0xb3   : > { %v349_v31 = vld [vmem:[#allocation2] sm:$0x77]  ;;  %v477_v35 = vcombine.high %v473_v28, %v473_v28  ;;  %v500_v42 = vld [vmem:[#allocation2 + $0x8] sm:$0x7]  ;;  %2023 = vmatpush3.bf16.msra.mxu1 %v2022_v12  ;;  %v665_v21 = vld [vmem:[#allocation6 + $0xd0] sm:$0xff] }
  0xb4   : > { %v354_v33 = vrot.slane %v349_v31, 5  ;;  %v353_v36 = vcombine.high %v349_v31, %v349_v31  ;;  %v520_v37 = vld [vmem:[#allocation2] sm:$0x77]  ;;  %v506_v44 = vrot.slane %v500_v42, 3  ;;  %v649_v24 = vld [vmem:[#allocation6 + $0x50] sm:$0xff] }
  0xb5   : > { %529 = vrot.lane.b32.xlu0 %v521_v18, %s2314_s30  ;;  %v499_v38 = vld [vmem:[#allocation2] sm:$0x77]  ;;  %v524_v39 = vcombine.high %v520_v37, %v520_v37 }
  0xb6   : > { %377 = vrot.lane.b32.xlu1 %v370_v19, %s2311_s27  ;;  %v355_v40 = vrot.slane %v353_v36, 5  ;;  %v503_v41 = vcombine.high %v499_v38, %v499_v38  ;;  %v504_v45 = vrot.slane %v499_v38, 3  ;;  %v663_v13 = vld [vmem:[#allocation6 + $0xc0] sm:$0xff]  ;;  %v664_v16 = vld [vmem:[#allocation6 + $0xc8] sm:$0xff] }
  0xb7   : > { %v2024_v17 = vpack.c.bf16 %v664_v16, %v663_v13  ;;  %v647_v18 = vld [vmem:[#allocation6 + $0x40] sm:$0xff]  ;;  %v648_v19 = vld [vmem:[#allocation6 + $0x48] sm:$0xff] }
  0xb8   : > { %v505_v43 = vrot.slane %v503_v41, 3  ;;  %v2026_v20 = vpack.c.bf16 %v648_v19, %v647_v18  ;;  %v652_v31 = vld [vmem:[#allocation6 + $0x68] sm:$0xff] }
  0xb9   : > { %405 = vrot.lane.b32.xlu0 %v400_v22, %s2310_s26  ;;  %v666_v22 = vld [vmem:[#allocation6 + $0xd8] sm:$0xff]  ;;  %2025 = vmatprep.subr.bf16.mxu1 %v2024_v17 }
  0xba   : > { %450 = vrot.lane.b32.xlu1 %v445_v23, %s2312_s28  ;;  %v2028_v23 = vpack.c.bf16 %v666_v22, %v665_v21  ;;  %2027 = vmatpush3.bf16.msra.mxu1 %v2026_v20 }
  0xbc   : > { %2029 = vmatprep.subr.bf16.mxu1 %v2028_v23 }
  0xbd   : > { %434 = vrot.lane.b32.xlu0 %v426_v26, %s2315_s8 }
  0xbe   : > { %361 = vrot.lane.b32.xlu1 %v356_v25, %s2316_s9  ;;  %v650_v25 = vld [vmem:[#allocation6 + $0x58] sm:$0xff] }
  0xbf   : > { %v2030_v26 = vpack.c.bf16 %v650_v25, %v649_v24 }
  0xc1   : > { %478 = vrot.lane.b32.xlu0 %v473_v28, %s2313_s29  ;;  %v668_v28 = vld [vmem:[#allocation6 + $0xe8] sm:$0xff]  ;;  %2031 = vmatpush3.bf16.msra.mxu1 %v2030_v26 }
  0xc2   : > { %436 = vrot.lane.b32.xlu1 %v2260_v27, %s2315_s8  ;;  %v667_v27 = vld [vmem:[#allocation6 + $0xe0] sm:$0xff] }
  0xc5   : > { %379 = vrot.lane.b32.xlu0 %v376_v29, %s2311_s27  ;;  %v2032_v29 = vpack.c.bf16 %v668_v28, %v667_v27 }
  0xc6   : > { %407 = vrot.lane.b32.xlu1 %v404_v30, %s2310_s26  ;;  %v651_v30 = vld [vmem:[#allocation6 + $0x60] sm:$0xff] }
  0xc7   : > { %2033 = vmatprep.subr.bf16.mxu1 %v2032_v29 }
  0xc9   : > { %357 = vrot.lane.b32.xlu0 %v354_v33, %s2316_s9 }
  0xca   : > { %452 = vrot.lane.b32.xlu1 %v449_v32, %s2312_s28  ;;  %v2034_v32 = vpack.c.bf16 %v652_v31, %v651_v30 }
  0xcc   : > { %2035 = vmatpush3.bf16.msra.mxu1 %v2034_v32 }
  0xcd   : > { %480 = vrot.lane.b32.xlu0 %v477_v35, %s2313_s29 }
  0xce   : > { %432 = vrot.lane.b32.xlu1 %v430_v34, %s2315_s8 }
  0xd1   : > { %359 = vrot.lane.b32.xlu0 %v355_v40, %s2316_s9 }
  0xd2   : > { %527 = vrot.lane.b32.xlu1 %v524_v39, %s2314_s30 }
  0xd5   : > { %511 = vrot.lane.b32.xlu0 %v506_v44, %s2317_s10 }
  0xd6   : > { %509 = vrot.lane.b32.xlu1 %v505_v43, %s2317_s10 }
  0xd9   : > { %507 = vrot.lane.b32.xlu0 %v504_v45, %s2317_s10 }
  0xda   : > { %525 = vrot.lane.b32.xlu1 %v520_v37, %s2314_s30  ;;  %s1709_s30 = sshll.u32 %s2706_s25, 4 }
  0xdb   : > { %s293_s10 = scalar_lea.vmem %s2685_s7, %s1709_s30 }
  0xde   : > { %552 = vperm.xlu1 %2253, %v549_v46   ;;  %v743_v46 = vld [vmem:[#allocation6 + $0x108] sm:$0xff] }
 0x11f   : > { %v410_v33 = vpop.permute.xlu0 %409 }
 0x120   : > { %v382_v34 = vpop.permute.xlu1 %381 }
 0x123   : > { %v455_v35 = vpop.permute.xlu0 %454 }
 0x124   : > { %v483_v36 = vpop.permute.xlu1 %482 }
 0x127   : > { %v530_v37 = vpop.permute.xlu0 %529 }
 0x128   : > { %v378_v38 = vpop.permute.xlu1 %377 }
 0x12b   : > { %v406_v39 = vpop.permute.xlu0 %405 }
 0x12c   : > { %v451_v40 = vpop.permute.xlu1 %450 }
 0x12f   : > { %v435_v41 = vpop.permute.xlu0 %434 }
 0x130   : > { %v362_v42 = vpop.permute.xlu1 %361 }
 0x133   : > { %v479_v43 = vpop.permute.xlu0 %478 }
 0x134   : > { %v437_v44 = vpop.permute.xlu1 %436 }
 0x135   : > { %v440_v45 = vsel %vm438_vm8, %v435_v41, %v437_v44 }
 0x136   : > { %444 = vst [vmem:[#allocation3 + $0x18] sm:$0x70] %v440_v45  ;;  %v742_v45 = vld [vmem:[#allocation6 + $0x100] sm:$0xff] }
 0x137   : > { %v380_v49 = vpop.permute.xlu0 %379 }
 0x138   : > { %v408_v48 = vpop.permute.xlu1 %407  ;;  %v384_v52 = vsel %vm383_vm10, %v378_v38, %v380_v49  ;;  %v385_v53 = vsel %vm383_vm10, %v380_v49, %v382_v34  ;;  %v761_v49 = vld [vmem:[#allocation6 + $0x198] sm:$0xff]  ;;  %vm1078_vm10 = vcmask 523264  }
 0x139   : > { %v412_v50 = vsel %vm411_vm9, %v406_v39, %v408_v48  ;;  %v413_v51 = vsel %vm411_vm9, %v408_v48, %v410_v33  ;;  %v388_v7 = vsel %vm2472_vm11, %v384_v52, 0.0  ;;  %v389_v11 = vsel %vm2478_vm12, %v385_v53, 0.0  ;;  %v760_v48 = vld [vmem:[#allocation6 + $0x190] sm:$0xff] }
 0x13a   : > { %v416_v54 = vsel %vm2435_vm6, %v412_v50, 0.0  ;;  %v417_v10 = vsel %vm2441_vm7, %v413_v51, 0.0  ;;  %v392_v57 = vrot.slane %v388_v7, 2  ;;  %v393_v58 = vrot.slane %v389_v11, 2  ;;  %v540_v50 = vld [vmem:[%s2679_s1] sm:$0xff]  ;;  %v744_v53 = vld [vmem:[#allocation6 + $0x110] sm:$0xff] }
 0x13b   : > { %v420_v55 = vrot.slane %v416_v54, 7  ;;  %v421_v56 = vrot.slane %v417_v10, 7  ;;  %v358_v60 = vpop.permute.xlu0 %357  ;;  %v2042_v51 = vpack.c.bf16 %v743_v46, %v742_v45  ;;  %v2044_v52 = vpack.c.bf16 %v761_v49, %v760_v48  ;;  %v745_v54 = vld [vmem:[#allocation6 + $0x118] sm:$0xff]  ;;  %v762_v10 = vld [vmem:[#allocation6 + $0x1a0] sm:$0xff]  ;;  %v763_v7 = vld [vmem:[#allocation6 + $0x1a8] sm:$0xff] }
 0x13c   : > { %v453_v59 = vpop.permute.xlu1 %452  ;;  %396 = vst [vmem:[#allocation3 + $0x10] ss:$-12 sps:$4 sm:$0xc1] %v392_v57   ;;  %397 = vst [vmem:[#allocation3 + $0x18] ss:$-12 sps:$4 sm:$0xc1] %v393_v58   ;;  %v2046_v11 = vpack.c.bf16 %v745_v54, %v744_v53 }
 0x13d   : > { %424 = vst [vmem:[#allocation3 + $0x10] sm:$0xe] %v420_v55  ;;  %425 = vst [vmem:[#allocation3 + $0x18] sm:$0xe] %v421_v56  ;;  %v457_v61 = vsel %vm456_vm13, %v451_v40, %v453_v59  ;;  %v458_v62 = vsel %vm456_vm13, %v453_v59, %v455_v35  ;;  %v758_v40 = vld [vmem:[#allocation6 + $0x180] sm:$0xff]  ;;  %v2048_v55 = vpack.c.bf16 %v763_v7, %v762_v10  ;;  %v747_v57 = vld [vmem:[#allocation6 + $0x128] sm:$0xff] }
 0x13e   : > { %v461_v63 = vsel %vm2472_vm11, %v457_v61, 0.0  ;;  %v462_v1 = vsel %vm2478_vm12, %v458_v62, 0.0  ;;  %v746_v56 = vld [vmem:[#allocation6 + $0x120] sm:$0xff]  ;;  %v764_v58 = vld [vmem:[#allocation6 + $0x1b0] sm:$0xff]  ;;  %v765_v59 = vld [vmem:[#allocation6 + $0x1b8] sm:$0xff]  ;;  %vm1588_vm13 = vcmask 130048  }
 0x13f   : > { %v465_v2 = vrot.slane %v461_v63, 1  ;;  %v466_v3 = vrot.slane %v462_v1, 1  ;;  %v481_v5 = vpop.permute.xlu0 %480  ;;  %v2052_v61 = vpack.c.bf16 %v765_v59, %v764_v58  ;;  %v748_v62 = vld [vmem:[#allocation6 + $0x130] sm:$0xff]  ;;  %v749_v63 = vld [vmem:[#allocation6 + $0x138] sm:$0xff]  ;;  %v766_v1 = vld [vmem:[#allocation6 + $0x1c0] sm:$0xff] }
 0x140   : > { %v433_v4 = vpop.permute.xlu1 %432  ;;  %v485_v9 = vsel %vm484_vm14, %v479_v43, %v481_v5  ;;  %v486_v12 = vsel %vm484_vm14, %v481_v5, %v483_v36  ;;  %v750_v5 = vld [vmem:[#allocation6 + $0x140] sm:$0xff]  ;;  %v951_v49 = vld [vmem:[#allocation6 + $0x308] sm:$0xff]  ;;  %v968_v53 = vld [vmem:[#allocation6 + $0x390] sm:$0xff] }
 0x141   : > { %469 = vst [vmem:[#allocation3 + $0x20] ss:$-12 sps:$4 sm:$0x83] %v465_v2   ;;  %470 = vst [vmem:[#allocation3 + $0x28] ss:$-12 sps:$4 sm:$0x83] %v466_v3   ;;  %v439_v8 = vsel %vm438_vm8, %v433_v4, %v435_v41  ;;  %v2054_v3 = vpack.c.bf16 %v749_v63, %v748_v62 }
 0x142   : > { %443 = vst [vmem:[#allocation3 + $0x10] sm:$0x70] %v439_v8  ;;  %v489_v13 = vsel %vm2435_vm6, %v485_v9, 0.0  ;;  %v490_v16 = vsel %vm2441_vm7, %v486_v12, 0.0  ;;  %v759_v41 = vld [vmem:[#allocation6 + $0x188] sm:$0xff]  ;;  %v768_v9 = vld [vmem:[#allocation6 + $0x1d0] sm:$0xff] }
 0x143   : > { %v493_v17 = vrot.slane %v489_v13, 6  ;;  %v494_v18 = vrot.slane %v490_v16, 6  ;;  %v360_v20 = vpop.permute.xlu0 %359  ;;  %v2040_v44 = vpack.c.bf16 %v759_v41, %v758_v40  ;;  %v767_v2 = vld [vmem:[#allocation6 + $0x1c8] sm:$0xff]  ;;  %v769_v12 = vld [vmem:[#allocation6 + $0x1d8] sm:$0xff]  ;;  %v950_v48 = vld [vmem:[#allocation6 + $0x300] sm:$0xff]  ;;  %vm1053_vm6 = vcmask 72704  }
 0x144   : > { %v528_v19 = vpop.permute.xlu1 %527  ;;  %v364_v22 = vsel %vm363_vm0, %v358_v60, %v360_v20  ;;  %v365_v23 = vsel %vm363_vm0, %v360_v20, %v362_v42  ;;  %v2050_v60 = vpack.c.bf16 %v747_v57, %v746_v56  ;;  %v2056_v4 = vpack.c.bf16 %v767_v2, %v766_v1  ;;  %v751_v8 = vld [vmem:[#allocation6 + $0x148] sm:$0xff]  ;;  %v969_v54 = vld [vmem:[#allocation6 + $0x398] sm:$0xff]  ;;  %v952_v58 = vld [vmem:[#allocation6 + $0x310] sm:$0xff]  ;;  %1054 = vst.msk [vmem:[#allocation4] sm:$0xff] %vm1053_vm6, %v2308_v0 }
 0x145   : > { %497 = vst [vmem:[#allocation3 + $0x20] sm:$0x1c] %v493_v17  ;;  %498 = vst [vmem:[#allocation3 + $0x28] sm:$0x1c] %v494_v18  ;;  %v533_v21 = vsel %vm531_vm15, %v528_v19, %v530_v37  ;;  %v2058_v13 = vpack.c.bf16 %v751_v8, %v750_v5  ;;  %v2060_v16 = vpack.c.bf16 %v769_v12, %v768_v9  ;;  %v752_v17 = vld [vmem:[#allocation6 + $0x150] sm:$0xff]  ;;  %v753_v18 = vld [vmem:[#allocation6 + $0x158] sm:$0xff] }
 0x146   : > { %v537_v24 = vsel %vm2478_vm12, %v533_v21, 0.0  ;;  %368 = vst [vmem:[#allocation3] sm:$0x38] %v364_v22  ;;  %369 = vst [vmem:[#allocation3 + $0x8] sm:$0x38] %v365_v23  ;;  %v771_v20 = vld [vmem:[#allocation6 + $0x1e8] sm:$0xff]  ;;  %v2062_v21 = vpack.c.bf16 %v753_v18, %v752_v17  ;;  %v2108_v62 = vpack.c.bf16 %v969_v54, %v968_v53 }
 0x147   : > { %539 = vst [vmem:[#allocation3 + $0x38] sm:$0x7] %v537_v24  ;;  %v512_v15 = vpop.permute.xlu0 %511  ;;  %v754_v23 = vld [vmem:[#allocation6 + $0x160] sm:$0xff]  ;;  %v755_v24 = vld [vmem:[#allocation6 + $0x168] sm:$0xff]  ;;  %v849_v56 = vld [vmem:[#allocation6 + $0x218] sm:$0xff]  ;;  %vm1055_vm7 = vcmask 671304  }
 0x148   : > { %v510_v14 = vpop.permute.xlu1 %509  ;;  %v544_v28 = vld [vmem:[#allocation3 + $0x18] sm:$0xff]  ;;  %v953_v59 = vld [vmem:[#allocation6 + $0x318] sm:$0xff]  ;;  %v970_v1 = vld [vmem:[#allocation6 + $0x3a0] sm:$0xff]  ;;  %1056 = vst.msk [vmem:[#allocation4] sm:$0xff] %vm1055_vm7, %v2308_v0  ;;  %vm1061_vm8 = vcmask 597064   ;;  %v1067_v0 = vand.u32 7, %v2422_v6 }
 0x149   : > { %v515_v25 = vsel %vm513_vm1, %v510_v14, %v512_v15  ;;  %v543_v33 = vld [vmem:[#allocation3 + $0x10] sm:$0xff]  ;;  %v669_v15 = vld [vmem:[#allocation6 + $0xf0] sm:$0xff]  ;;  %v867_v63 = vld [vmem:[#allocation6 + $0x2a8] sm:$0xff] }
 0x14a   : > { %519 = vst [vmem:[#allocation3 + $0x28] sm:$0xe0] %v515_v25  ;;  %v670_v25 = vld [vmem:[#allocation6 + $0xf8] sm:$0xff]  ;;  %v971_v2 = vld [vmem:[#allocation6 + $0x3a8] sm:$0xff]  ;;  %v850_v5 = vld [vmem:[#allocation6 + $0x220] sm:$0xff]  ;;  %vm2519_vm9 = vcmp.gt.s32.totalorder %v1067_v0, 0 }
 0x14b   : > { %v508_v27 = vpop.permute.xlu0 %507  ;;  %v851_v8 = vld [vmem:[#allocation6 + $0x228] sm:$0xff]  ;;  %v2112_v12 = vpack.c.bf16 %v971_v2, %v970_v1  ;;  %v868_v17 = vld [vmem:[#allocation6 + $0x2b0] sm:$0xff]  ;;  %v869_v18 = vld [vmem:[#allocation6 + $0x2b8] sm:$0xff]  ;;  %vm2559_vm12 = vcmp.lt.s32.totalorder %v1067_v0, 7 }
 0x14c   : > { %v526_v26 = vpop.permute.xlu1 %525  ;;  %v514_v30 = vsel %vm513_vm1, %v508_v27, %v510_v14  ;;  %v2066_v14 = vpack.c.bf16 %v755_v24, %v754_v23  ;;  %v2036_v27 = vpack.c.bf16 %v670_v25, %v669_v15  ;;  %v852_v23 = vld [vmem:[#allocation6 + $0x230] sm:$0xff]  ;;  %v853_v24 = vld [vmem:[#allocation6 + $0x238] sm:$0xff]  ;;  %v978_v53 = vld [vmem:[#allocation6 + $0x3e0] sm:$0xff] }
 0x14d   : > { %v532_v29 = vsel %vm531_vm15, %v526_v26, %v528_v19  ;;  %v542_v31 = vld [vmem:[#allocation3 + $0x8] sm:$0xff]  ;;  %v541_v32 = vld [vmem:[#allocation3] sm:$0xff]  ;;  %518 = vst [vmem:[#allocation3 + $0x20] sm:$0xe0] %v514_v30  ;;  %v770_v19 = vld [vmem:[#allocation6 + $0x1e0] sm:$0xff] }
 0x14e   : > { %v536_v34 = vsel %vm2472_vm11, %v532_v29, 0.0  ;;  %v1998_v35 = vpack.c.bf16 %v544_v28, %v542_v31  ;;  %v2000_v36 = vpack.c.bf16 %v543_v33, %v541_v32  ;;  %v548_v38 = vld [vmem:[#allocation3 + $0x38] sm:$0x7]  ;;  %v2064_v22 = vpack.c.bf16 %v771_v20, %v770_v19  ;;  %v772_v26 = vld [vmem:[#allocation6 + $0x1f0] sm:$0xff]  ;;  %v773_v28 = vld [vmem:[#allocation6 + $0x1f8] sm:$0xff]  ;;  %2037 = vmatprep.subr.bf16.mxu1 %v2036_v27 }
 0x14f   : > { %538 = vst [vmem:[#allocation3 + $0x30] sm:$0x7] %v536_v34  ;;  %v653_v29 = vld [vmem:[#allocation6 + $0x70] sm:$0xff]  ;;  %v654_v30 = vld [vmem:[#allocation6 + $0x78] sm:$0xff]  ;;  %v2068_v31 = vpack.c.bf16 %v773_v28, %v772_v26  ;;  %v870_v27 = vld [vmem:[#allocation6 + $0x2c0] sm:$0xff]  ;;  %vm1157_vm11 = vcmask 588800  }
 0x150   : > { %1999 = vmatprep.subr.bf16.mxu0 %v1998_v35  ;;  %v2038_v32 = vpack.c.bf16 %v654_v30, %v653_v29  ;;  %v756_v33 = vld [vmem:[#allocation6 + $0x170] sm:$0xff]  ;;  %v757_v34 = vld [vmem:[#allocation6 + $0x178] sm:$0xff]  ;;  %v862_v35 = vld [vmem:[#allocation6 + $0x280] sm:$0xff] }
 0x151   : > { %2001 = vmatpush1.bf16.msra.mxu0 %v2000_v36  ;;  %v546_v37 = vld [vmem:[#allocation3 + $0x28] sm:$0xff]  ;;  %v2070_v36 = vpack.c.bf16 %v757_v34, %v756_v33  ;;  %v972_v19 = vld [vmem:[#allocation6 + $0x3b0] sm:$0xff]  ;;  %v871_v28 = vld [vmem:[#allocation6 + $0x2c8] sm:$0xff] }
 0x152   : > { %v2002_v39 = vpack.c.bf16 %v548_v38, %v546_v37  ;;  %v863_v37 = vld [vmem:[#allocation6 + $0x288] sm:$0xff]  ;;  %v966_v38 = vld [vmem:[#allocation6 + $0x380] sm:$0xff]  ;;  %2039 = vmatpush3.bf16.msra.mxu1 %v2038_v32  ;;  %v973_v20 = vld [vmem:[#allocation6 + $0x3b8] sm:$0xff] }
 0x153   : > { %v2072_v40 = vpack.c.bf16 %v863_v37, %v862_v35  ;;  %v2116_v15 = vpack.c.bf16 %v973_v20, %v972_v19  ;;  %v956_v25 = vld [vmem:[#allocation6 + $0x330] sm:$0xff]  ;;  %v957_v26 = vld [vmem:[#allocation6 + $0x338] sm:$0xff]  ;;  %v974_v29 = vld [vmem:[#allocation6 + $0x3c0] sm:$0xff]  ;;  %v2088_v35 = vpack.c.bf16 %v871_v28, %v870_v27 }
 0x154   : > { %2004 = vmatprep.subr.msk.bf16.mxu0 %vm2003_vm4, %v2002_v39  ;;  %v545_v42 = vld [vmem:[#allocation3 + $0x20] sm:$0xff]  ;;  %v967_v39 = vld [vmem:[#allocation6 + $0x388] sm:$0xff]  ;;  %v2118_v32 = vpack.c.bf16 %v957_v26, %v956_v25  ;;  %v854_v33 = vld [vmem:[#allocation6 + $0x240] sm:$0xff] }
 0x155   : > { %v2104_v41 = vpack.c.bf16 %v967_v39, %v966_v38  ;;  %2073 = vmatprep.subr.bf16.mxu1 %v2072_v40  ;;  %v975_v30 = vld [vmem:[#allocation6 + $0x3c8] sm:$0xff]  ;;  %v958_v37 = vld [vmem:[#allocation6 + $0x340] sm:$0xff]  ;;  %v872_v39 = vld [vmem:[#allocation6 + $0x2d0] sm:$0xff] }
 0x156   : > { %v547_v43 = vld [vmem:[#allocation3 + $0x30] sm:$0x7]  ;;  %v855_v34 = vld [vmem:[#allocation6 + $0x248] sm:$0xff]  ;;  %v873_v40 = vld [vmem:[#allocation6 + $0x2d8] sm:$0xff] }
 0x157   : > { %v2005_v47 = vpack.c.bf16 %v547_v43, %v545_v42  ;;  %v959_v38 = vld [vmem:[#allocation6 + $0x348] sm:$0xff]  ;;  %v981_v1 = vld [vmem:[#allocation6 + $0x3f8] sm:$0xff] }
 0x158   : > { %v979_v54 = vld [vmem:[#allocation6 + $0x3e8] sm:$0xff] }
 0x159   : > { %2007 = vmatpush1.bf16.msk.msra.mxu0 %vm2003_vm4, %v2005_v47  ;;  %v847_v47 = vld [vmem:[#allocation6 + $0x208] sm:$0xff] }
 0x15a   : > { %2041 = vmatprep.subr.bf16.mxu0 %v2040_v44  ;;  %v846_v44 = vld [vmem:[#allocation6 + $0x200] sm:$0xff] }
 0x15b   : > { %v2074_v7 = vpack.c.bf16 %v847_v47, %v846_v44  ;;  %v2122_v44 = vpack.c.bf16 %v959_v38, %v958_v37  ;;  %v2092_v47 = vpack.c.bf16 %v873_v40, %v872_v39  ;;  %v1134_v6 = vld [vmem:[%s2681_s3] sm:$0xff]  ;;  %v1242_v37 = vld [vmem:[%s2684_s6 + $0x8] sm:$0xff]  ;;  %v1243_v39 = vld [vmem:[%s2684_s6 + $0x10] sm:$0xff] }
 0x15c   : > { %1671 = vmatmul.mubr.msk.f32.vlgmr.msra.gmra.mrb[0].mxu0 %vm555_vm5, %v540_v50  ;;  %v1244_v40 = vld [vmem:[%s2684_s6 + $0x18] sm:$0xff] }
 0x15d   : > { %2043 = vmatpush3.bf16.msra.mxu0 %v2042_v51  ;;  %v553_v42 = vpop.permute.xlu1 %552  ;;  %v864_v51 = vld [vmem:[#allocation6 + $0x290] sm:$0xff] }
 0x15e   : > { %2045 = vmatprep.subr.bf16.mxu0 %v2044_v52  ;;  %v865_v52 = vld [vmem:[#allocation6 + $0x298] sm:$0xff] }
 0x161   : > { %2047 = vmatpush3.bf16.msra.mxu0 %v2046_v11  ;;  %v2106_v11 = vpack.c.bf16 %v951_v49, %v950_v48  ;;  %v960_v49 = vld [vmem:[#allocation6 + $0x350] sm:$0xff] }
 0x162   : > { %2049 = vmatprep.subr.bf16.mxu0 %v2048_v55  ;;  %v848_v55 = vld [vmem:[#allocation6 + $0x210] sm:$0xff] }
 0x165   : > { %2051 = vmatpush3.bf16.msra.mxu0 %v2050_v60  ;;  %v866_v60 = vld [vmem:[#allocation6 + $0x2a0] sm:$0xff] }
 0x166   : > { %2053 = vmatprep.subr.bf16.mxu0 %v2052_v61  ;;  %v2076_v61 = vpack.c.bf16 %v865_v52, %v864_v51  ;;  %v2080_v9 = vpack.c.bf16 %v867_v63, %v866_v60  ;;  %v874_v51 = vld [vmem:[#allocation6 + $0x2e0] sm:$0xff]  ;;  %v875_v52 = vld [vmem:[#allocation6 + $0x2e8] sm:$0xff]  ;;  %v980_v63 = vld [vmem:[#allocation6 + $0x3f0] sm:$0xff] }
 0x167   : > { %v963_v60 = vld [vmem:[#allocation6 + $0x368] sm:$0xff] }
 0x169   : > { %2055 = vmatpush3.bf16.msra.mxu0 %v2054_v3  ;;  %v2078_v3 = vpack.c.bf16 %v849_v56, %v848_v55  ;;  %v859_v55 = vld [vmem:[#allocation6 + $0x268] sm:$0xff]  ;;  %v2096_v56 = vpack.c.bf16 %v875_v52, %v874_v51 }
 0x16a   : > { %2057 = vmatprep.subr.bf16.mxu0 %v2056_v4  ;;  %v2110_v4 = vpack.c.bf16 %v953_v59, %v952_v58  ;;  %v2128_v58 = vpack.c.bf16 %v979_v54, %v978_v53  ;;  %v962_v59 = vld [vmem:[#allocation6 + $0x360] sm:$0xff] }
 0x16d   : > { %2059 = vmatpush3.bf16.msra.mxu0 %v2058_v13  ;;  %v954_v13 = vld [vmem:[#allocation6 + $0x320] sm:$0xff] }
 0x16e   : > { %2061 = vmatprep.subr.bf16.mxu0 %v2060_v16  ;;  %v955_v16 = vld [vmem:[#allocation6 + $0x328] sm:$0xff] }
 0x171   : > { %2063 = vmatpush3.bf16.msra.mxu0 %v2062_v21  ;;  %v2082_v21 = vpack.c.bf16 %v851_v8, %v850_v5  ;;  %v2132_v8 = vpack.c.bf16 %v981_v1, %v980_v63 }
 0x172   : > { %2065 = vmatprep.subr.bf16.mxu0 %v2064_v22  ;;  %v2114_v22 = vpack.c.bf16 %v955_v16, %v954_v13  ;;  %v965_v13 = vld [vmem:[#allocation6 + $0x378] sm:$0xff] }
 0x175   : > { %2067 = vmatpush3.bf16.msra.mxu0 %v2066_v14  ;;  %v2084_v14 = vpack.c.bf16 %v869_v18, %v868_v17 }
 0x176   : > { %2069 = vmatprep.subr.bf16.mxu0 %v2068_v31  ;;  %v2086_v31 = vpack.c.bf16 %v853_v24, %v852_v23 }
 0x179   : > { %2071 = vmatpush3.bf16.msra.mxu0 %v2070_v36  ;;  %v2120_v36 = vpack.c.bf16 %v975_v30, %v974_v29 }
 0x17a   : > { %2105 = vmatprep.subr.bf16.mxu0 %v2104_v41  ;;  %v976_v41 = vld [vmem:[#allocation6 + $0x3d0] sm:$0xff] }
 0x22f   : > { %v632_v43 = vpop.f32.mrb[0].mxu0 }
 0x230   : > { %v633_v45 = vadd.f32 %v632_v43, %v553_v42  ;;  %v634_v46 = vpop.f32.mrb[1].mxu0  ;;  %v2090_v43 = vpack.c.bf16 %v855_v34, %v854_v33  ;;  %v1145_v34 = vld [vmem:[%s2682_s4] sm:$0xff] }
 0x231   : > { %v635_v50 = vadd.f32 %v634_v46, %v553_v42  ;;  %v977_v42 = vld [vmem:[#allocation6 + $0x3d8] sm:$0xff] }
 0x232   : > { %v2510_v57 = vmax.f32 %v633_v45, 0.0  ;;  %v856_v45 = vld [vmem:[#allocation6 + $0x250] sm:$0xff]  ;;  %v857_v46 = vld [vmem:[#allocation6 + $0x258] sm:$0xff]  ;;  %v2124_v48 = vpack.c.bf16 %v977_v42, %v976_v41  ;;  %v2156_v41 = vpack.c.bf16 %v1244_v40, %v1243_v39  ;;  %v1245_v42 = vld [vmem:[%s2684_s6 + $0x20] sm:$0xff] }
 0x233   : > { %v638_v10 = vmax.f32 %v635_v50, 0.0  ;;  %v961_v50 = vld [vmem:[#allocation6 + $0x358] sm:$0xff] }
 0x234   : > { %v1699_v39 = vld [vmem:[%s2684_s6 + $0xd8] sm:$0xff] }
 0x235   : > { %735 = vmatprep.mubr.f32.mxu1 %v638_v10  ;;  %838 = vmatprep.mubr.f32.mxu0 %v638_v10 }
 0x236   : > { %736 = vmatmul.mubr.f32.vlgmr.msra.gmra.mrb[0].mxu1 %v2510_v57  ;;  %839 = vmatmul.mubr.f32.vlgmr.msra.gmra.mrb[2].mxu0 %v2510_v57 }
 0x237   : > { %2075 = vmatpush3.bf16.msra.mxu1 %v2074_v7  ;;  %2107 = vmatpush3.bf16.msra.mxu0 %v2106_v11  ;;  %v2126_v7 = vpack.c.bf16 %v961_v50, %v960_v49  ;;  %v858_v11 = vld [vmem:[#allocation6 + $0x260] sm:$0xff] }
 0x238   : > { %942 = vmatprep.mubr.f32.mxu1 %v638_v10  ;;  %1046 = vmatprep.mubr.f32.mxu0 %v638_v10  ;;  %v2094_v10 = vpack.c.bf16 %v857_v46, %v856_v45  ;;  %v2098_v2 = vpack.c.bf16 %v859_v55, %v858_v11  ;;  %v1691_v45 = vld [vmem:[%s2684_s6 + $0xa8] sm:$0xff] }
 0x239   : > { %2077 = vmatprep.subr.bf16.mxu1 %v2076_v61  ;;  %2109 = vmatprep.subr.bf16.mxu0 %v2108_v62  ;;  %v876_v61 = vld [vmem:[#allocation6 + $0x2f0] sm:$0xff]  ;;  %v877_v62 = vld [vmem:[#allocation6 + $0x2f8] sm:$0xff] }
 0x23a   : > { %v2100_v5 = vpack.c.bf16 %v877_v62, %v876_v61 }
 0x23b   : > { %2079 = vmatpush3.bf16.msra.mxu1 %v2078_v3  ;;  %2111 = vmatpush3.bf16.msra.mxu0 %v2110_v4  ;;  %v2130_v3 = vpack.c.bf16 %v963_v60, %v962_v59  ;;  %v860_v4 = vld [vmem:[#allocation6 + $0x270] sm:$0xff] }
 0x23c   : > { %2081 = vmatprep.subr.bf16.mxu1 %v2080_v9  ;;  %2113 = vmatprep.subr.bf16.mxu0 %v2112_v12  ;;  %v861_v9 = vld [vmem:[#allocation6 + $0x278] sm:$0xff]  ;;  %v964_v12 = vld [vmem:[#allocation6 + $0x370] sm:$0xff] }
 0x23d   : > { %v2102_v16 = vpack.c.bf16 %v861_v9, %v860_v4  ;;  %v2134_v17 = vpack.c.bf16 %v965_v13, %v964_v12  ;;  %v1677_v9 = vld [vmem:[%s2684_s6 + $0x48] sm:$0xff]  ;;  %v1678_v13 = vld [vmem:[%s2684_s6 + $0x50] sm:$0xff] }
 0x23f   : > { %2083 = vmatpush3.bf16.msra.mxu1 %v2082_v21  ;;  %2115 = vmatpush3.bf16.msra.mxu0 %v2114_v22 }
 0x240   : > { %2085 = vmatprep.subr.bf16.mxu1 %v2084_v14  ;;  %2117 = vmatprep.subr.bf16.mxu0 %v2116_v15 }
 0x243   : > { %2087 = vmatpush3.bf16.msra.mxu1 %v2086_v31  ;;  %2119 = vmatpush3.bf16.msra.mxu0 %v2118_v32 }
 0x244   : > { %2089 = vmatprep.subr.bf16.mxu1 %v2088_v35  ;;  %2121 = vmatprep.subr.bf16.mxu0 %v2120_v36  ;;  %v1146_v35 = vld [vmem:[%s2682_s4 + $0x8] sm:$0xff]  ;;  %v1241_v36 = vld [vmem:[%s2684_s6] sm:$0xff] }
 0x245   : > { %v2152_v38 = vpack.c.bf16 %v1242_v37, %v1241_v36  ;;  %v1688_v36 = vld [vmem:[%s2684_s6 + $0x90] sm:$0xff]  ;;  %v1689_v37 = vld [vmem:[%s2684_s6 + $0x98] sm:$0xff] }
 0x247   : > { %2091 = vmatpush3.bf16.msra.mxu1 %v2090_v43  ;;  %2123 = vmatpush3.bf16.msra.mxu0 %v2122_v44  ;;  %v1246_v43 = vld [vmem:[%s2684_s6 + $0x28] sm:$0xff] }
 0x248   : > { %2093 = vmatprep.subr.bf16.mxu1 %v2092_v47  ;;  %2125 = vmatprep.subr.bf16.mxu0 %v2124_v48  ;;  %v2160_v44 = vpack.c.bf16 %v1246_v43, %v1245_v42  ;;  %v1690_v42 = vld [vmem:[%s2684_s6 + $0xa0] sm:$0xff]  ;;  %v2188_v43 = vpack.c.bf16 %v1689_v37, %v1688_v36 }
 0x24b   : > { %2095 = vmatpush3.bf16.msra.mxu1 %v2094_v10  ;;  %2127 = vmatpush3.bf16.msra.mxu0 %v2126_v7 }
 0x24c   : > { %2097 = vmatprep.subr.bf16.mxu1 %v2096_v56  ;;  %2129 = vmatprep.subr.bf16.mxu0 %v2128_v58 }
 0x24f   : > { %2099 = vmatpush3.bf16.msra.mxu1 %v2098_v2  ;;  %2131 = vmatpush3.bf16.msra.mxu0 %v2130_v3 }
 0x250   : > { %2101 = vmatprep.subr.bf16.mxu1 %v2100_v5  ;;  %2133 = vmatprep.subr.bf16.mxu0 %v2132_v8  ;;  %v1676_v8 = vld [vmem:[%s2684_s6 + $0x40] sm:$0xff] }
 0x253   : > { %2103 = vmatpush3.bf16.msra.mxu1 %v2102_v16  ;;  %2135 = vmatpush3.bf16.msra.mxu0 %v2134_v17  ;;  %v1679_v16 = vld [vmem:[%s2684_s6 + $0x58] sm:$0xff]  ;;  %v2168_v17 = vpack.c.bf16 %v1677_v9, %v1676_v8 }
 0x254   : > { %2153 = vmatprep.subr.bf16.mxu0 %v2152_v38 }
 0x256   : > { %943 = vmatmul.mubr.f32.vlgmr.msra.gmra.mrb[2].mxu1 %v2510_v57  ;;  %1047 = vmatmul.mubr.f32.vlgmr.msra.gmra.mrb[4].mxu0 %v2510_v57 }
 0x257   : > { %1919 = vmatprep.mubr.msk.f32.mxu1 %vm1157_vm11, %v1134_v6  ;;  %2155 = vmatpush3.bf16.msra.mxu0 %v2152_v38  ;;  %v1698_v38 = vld [vmem:[%s2684_s6 + $0xd0] sm:$0xff] }
 0x258   : > { %2157 = vmatprep.subr.bf16.mxu0 %v2156_v41 }
 0x25b   : > { %2159 = vmatpush3.bf16.msra.mxu0 %v2156_v41 }
 0x25c   : > { %2161 = vmatprep.subr.bf16.mxu0 %v2160_v44 }
 0x25f   : > { %2163 = vmatpush3.bf16.msra.mxu0 %v2160_v44  ;;  %v2204_v44 = vpack.c.bf16 %v1699_v39, %v1698_v38 }
 0x309   : > { %v1742_v18 = vpop.f32.mrb[0].mxu1  ;;  %v1777_v19 = vpop.f32.mrb[2].mxu0 }
 0x30a   : > { %v1743_v20 = vpop.f32.mrb[1].mxu1  ;;  %v1778_v21 = vpop.f32.mrb[3].mxu0 }
 0x30b   : > { %v1744_v22 = vadd.f32 %v1743_v20, %v1742_v18  ;;  %v1779_v23 = vadd.f32 %v1778_v21, %v1777_v19  ;;  %v1135_v18 = vld [vmem:[%s2681_s3 + $0x8] sm:$0xff]  ;;  %v2172_v19 = vpack.c.bf16 %v1679_v16, %v1678_v13  ;;  %v1680_v20 = vld [vmem:[%s2684_s6 + $0x60] sm:$0xff] }
 0x30c   : > { %v1681_v21 = vld [vmem:[%s2684_s6 + $0x68] sm:$0xff] }
 0x30d   : > { %v844_v24 = vmax.f32 %v1744_v22, %v1779_v23  ;;  %v2176_v22 = vpack.c.bf16 %v1681_v21, %v1680_v20  ;;  %v1247_v23 = vld [vmem:[%s2684_s6 + $0x30] sm:$0xff] }
 0x329   : > { %v1812_v14 = vpop.f32.mrb[2].mxu1  ;;  %v1847_v15 = vpop.f32.mrb[4].mxu0 }
 0x32a   : > { %v1813_v25 = vpop.f32.mrb[3].mxu1  ;;  %v1848_v26 = vpop.f32.mrb[5].mxu0 }
 0x32b   : > { %v1814_v27 = vadd.f32 %v1813_v25, %v1812_v14  ;;  %v1849_v28 = vadd.f32 %v1848_v26, %v1847_v15  ;;  %v1682_v14 = vld [vmem:[%s2684_s6 + $0x70] sm:$0xff]  ;;  %v1683_v25 = vld [vmem:[%s2684_s6 + $0x78] sm:$0xff] }
 0x32c   : > { %v2180_v26 = vpack.c.bf16 %v1683_v25, %v1682_v14 }
 0x32d   : > { %v948_v57 = vmax.f32 %v844_v24, %v1814_v27  ;;  %v1248_v24 = vld [vmem:[%s2684_s6 + $0x38] sm:$0xff]  ;;  %v1686_v27 = vld [vmem:[%s2684_s6 + $0x80] sm:$0xff] }
 0x32e   : > { %v2164_v15 = vpack.c.bf16 %v1248_v24, %v1247_v23 }
 0x32f   : > { %v1052_v29 = vmax.f32 %v948_v57, %v1849_v28  ;;  %v1687_v28 = vld [vmem:[%s2684_s6 + $0x88] sm:$0xff]  ;;  %v1696_v57 = vld [vmem:[%s2684_s6 + $0xc0] sm:$0xff] }
 0x330   : > { %2165 = vmatprep.subr.bf16.mxu0 %v2164_v15 }
 0x331   : > { %1058 = vrot.lane.b32.xlu0 %v1052_v29, %s2320_s15  ;;  %v2184_v29 = vpack.c.bf16 %v1687_v28, %v1686_v27  ;;  %2167 = vmatpush3.bf16.msra.mxu0 %v2164_v15 }
 0x333   : > { %2185 = vmatprep.subr.bf16.mxu0 %v2184_v29 }
 0x3a3   : > { %v1059_v30 = vpop.permute.xlu0 %1058 }
 0x3a4   : > { %1062 = vst.msk [vmem:[#allocation4] sm:$0xff] %vm1061_vm8, %v1059_v30  ;;  %v1697_v30 = vld [vmem:[%s2684_s6 + $0xc8] sm:$0xff] }
 0x3a5   : > { %v2200_v0 = vpack.c.bf16 %v1697_v30, %v1696_v57 }
 0x3ab   : > { %v1086_v32 = vld [vmem:[#allocation4] sm:$0xff] }
 0x3ac   : > { %1089 = vrot.lane.b32.xlu0 %v1086_v32, %s2311_s27  ;;  %1082 = vrot.lane.b32.xlu1 %v1086_v32, %s2316_s9  ;;  %v1077_v33 = vsel %vm2519_vm9, %v1086_v32, 0.0 }
 0x3ad   : > { %1079 = vst.msk [vmem:[#allocation5] sm:$0xff] %vm1078_vm10, %v1077_v33 }
 0x3b0   : > { %1109 = vrot.lane.b32.xlu0 %v1086_v32, %s2321_s16  ;;  %1096 = vrot.lane.b32.xlu1 %v1086_v32, %s2322_s17 }
 0x3b4   : > { %1116 = vrot.lane.b32.xlu0 %v1086_v32, %s2310_s26  ;;  %1103 = vrot.lane.b32.xlu1 %v1086_v32, %s2323_s18  ;;  %v1136_v10 = vld [vmem:[#allocation5] sm:$0xff] }
 0x3b8   : > { %1129 = vrot.lane.b32.xlu0 %v1086_v32, %s2312_s28  ;;  %1123 = vrot.lane.b32.xlu1 %v1086_v32, %s2315_s8 }
 0x3bc   : > { %1149 = vperm.xlu1 %2253, %v1145_v34   ;;  %1154 = vperm.xlu0 %2254, %v1146_v35  }
 0x41e   : > { %v1090_v46 = vpop.permute.xlu0 %1089  ;;  %v1083_v47 = vpop.permute.xlu1 %1082 }
 0x41f   : > { %v1092_v48 = vsel %vm2559_vm12, %v1090_v46, 0.0  ;;  %1085 = vst.msk [vmem:[#allocation5 + $0x8] sm:$0xff] %vm1078_vm10, %v1083_v47  ;;  %v1700_v46 = vld [vmem:[%s2684_s6 + $0xe0] sm:$0xff]  ;;  %v1701_v47 = vld [vmem:[%s2684_s6 + $0xe8] sm:$0xff] }
 0x420   : > { %1093 = vst.msk [vmem:[#allocation5 + $0x10] sm:$0xff] %vm1078_vm10, %v1092_v48  ;;  %v2192_v48 = vpack.c.bf16 %v1691_v45, %v1690_v42 }
 0x422   : > { %v1110_v49 = vpop.permute.xlu0 %1109  ;;  %v1097_v50 = vpop.permute.xlu1 %1096 }
 0x423   : > { %v1112_v51 = vsel %vm2559_vm12, %v1110_v49, 0.0  ;;  %v1099_v52 = vsel %vm2519_vm9, %v1097_v50, 0.0  ;;  %v2208_v49 = vpack.c.bf16 %v1701_v47, %v1700_v46  ;;  %v1692_v50 = vld [vmem:[%s2684_s6 + $0xb0] sm:$0xff] }
 0x424   : > { %1113 = vst.msk [vmem:[#allocation5 + $0x28] sm:$0xff] %vm1078_vm10, %v1112_v51  ;;  %1100 = vst.msk [vmem:[#allocation5 + $0x18] sm:$0xff] %vm1078_vm10, %v1099_v52  ;;  %v1693_v51 = vld [vmem:[%s2684_s6 + $0xb8] sm:$0xff]  ;;  %v1702_v52 = vld [vmem:[%s2684_s6 + $0xf0] sm:$0xff] }
 0x426   : > { %v1117_v53 = vpop.permute.xlu0 %1116  ;;  %v1104_v54 = vpop.permute.xlu1 %1103  ;;  %v1137_v7 = vld [vmem:[#allocation5 + $0x8] sm:$0xff] }
 0x427   : > { %v1119_v11 = vsel %vm2519_vm9, %v1117_v53, 0.0  ;;  %1106 = vst.msk [vmem:[#allocation5 + $0x20] sm:$0xff] %vm1078_vm10, %v1104_v54  ;;  %v2136_v55 = vpack.c.bf16 %v1137_v7, %v1136_v10  ;;  %v1138_v60 = vld [vmem:[#allocation5 + $0x10] sm:$0xff]  ;;  %v1703_v53 = vld [vmem:[%s2684_s6 + $0xf8] sm:$0xff]  ;;  %v2196_v54 = vpack.c.bf16 %v1693_v51, %v1692_v50 }
 0x428   : > { %1120 = vst.msk [vmem:[#allocation5 + $0x30] sm:$0xff] %vm1078_vm10, %v1119_v11  ;;  %v2212_v10 = vpack.c.bf16 %v1703_v53, %v1702_v52 }
 0x429   : > { %2137 = vmatprep.subr.bf16.mxu1 %v2136_v55 }
 0x42a   : > { %v1130_v56 = vpop.permute.xlu0 %1129  ;;  %v1124_v58 = vpop.permute.xlu1 %1123  ;;  %2139 = vmatpush3.bf16.msra.mxu1 %v2136_v55 }
 0x42b   : > { %v1132_v59 = vsel %vm2559_vm12, %v1130_v56, 0.0  ;;  %1126 = vst.msk [vmem:[#allocation5 + $0x38] sm:$0xff] %vm1078_vm10, %v1124_v58  ;;  %v1139_v61 = vld [vmem:[#allocation5 + $0x18] sm:$0xff]  ;;  %v1141_v1 = vld [vmem:[#allocation5 + $0x28] sm:$0xff] }
 0x42c   : > { %1133 = vst.msk [vmem:[#allocation5 + $0x40] sm:$0xff] %vm1078_vm10, %v1132_v59  ;;  %v2140_v62 = vpack.c.bf16 %v1139_v61, %v1138_v60 }
 0x42e   : > { %2141 = vmatprep.subr.bf16.mxu1 %v2140_v62  ;;  %v1140_v63 = vld [vmem:[#allocation5 + $0x20] sm:$0xff] }
 0x42f   : > { %2143 = vmatpush3.bf16.msra.mxu1 %v2140_v62  ;;  %v2144_v2 = vpack.c.bf16 %v1141_v1, %v1140_v63  ;;  %v1142_v3 = vld [vmem:[#allocation5 + $0x30] sm:$0xff] }
 0x431   : > { %2145 = vmatprep.subr.bf16.mxu1 %v2144_v2 }
 0x432   : > { %v1143_v4 = vld [vmem:[#allocation5 + $0x38] sm:$0xff] }
 0x433   : > { %2147 = vmatpush3.bf16.msra.mxu1 %v2144_v2  ;;  %v2148_v5 = vpack.c.bf16 %v1143_v4, %v1142_v3  ;;  %v1144_v12 = vld [vmem:[#allocation5 + $0x40] sm:$0xff] }
 0x435   : > { %2149 = vmatprep.subr.bf16.mxu1 %v2148_v5 }
 0x437   : > { %2151 = vmatpush3.bf16.msra.mxu1 %v2148_v5 }
 0x438   : > { %1917 = vmatprep.subr.mxu1 %v1144_v12 }
 0x43b   : > { %1918 = vmatpush3.msra.mxu1 %v1144_v12  ;;  %v1155_v31 = vpop.permute.xlu0 %1154  ;;  %v1150_v33 = vpop.permute.xlu1 %1149 }
 0x43c   : > { %1920 = vmatmul.mubr.msk.f32.vlgmr.msra.gmra.mrb[4].mxu1 %vm1157_vm11, %v1135_v18  ;;  %2169 = vmatprep.subr.bf16.mxu1 %v2168_v17 }
 0x43d   : > { %2171 = vmatpush3.bf16.msra.mxu1 %v2168_v17 }
 0x43e   : > { %2173 = vmatprep.subr.bf16.mxu1 %v2172_v19 }
 0x441   : > { %2175 = vmatpush3.bf16.msra.mxu1 %v2172_v19 }
 0x442   : > { %2177 = vmatprep.subr.bf16.mxu1 %v2176_v22 }
 0x445   : > { %2179 = vmatpush3.bf16.msra.mxu1 %v2176_v22 }
 0x446   : > { %2181 = vmatprep.subr.bf16.mxu1 %v2180_v26 }
 0x449   : > { %2183 = vmatpush3.bf16.msra.mxu1 %v2180_v26 }
 0x44a   : > { %2201 = vmatprep.subr.bf16.mxu1 %v2200_v0 }
 0x50f   : > { %v1921_v32 = vpop.f32.mrb[4].mxu1 }
 0x510   : > { %v1236_v6 = vadd.f32 %v1921_v32, %v1155_v31  ;;  %v1230_v34 = vpop.f32.mrb[5].mxu1 }
 0x511   : > { %v1231_v35 = vadd.f32 %v1230_v34, %v1150_v33 }
 0x512   : > { %v1240_v41 = vmax.f32 %v1236_v6, 0.0 }
 0x513   : > { %v1239_v40 = vmax.f32 %v1231_v35, 0.0 }
 0x515   : > { %1938 = vmatprep.mubr.msk.f32.mxu0 %vm1078_vm10, %v1239_v40  ;;  %1957 = vmatprep.mubr.msk.f32.mxu1 %vm1078_vm10, %v1239_v40 }
 0x516   : > { %1939 = vmatmul.mubr.msk.f32.vlgmr.msra.gmra.mrb[6].mxu0 %vm1078_vm10, %v1240_v41  ;;  %1958 = vmatmul.mubr.msk.f32.vlgmr.msra.gmra.mrb[6].mxu1 %vm1078_vm10, %v1240_v41 }
 0x517   : > { %2187 = vmatpush3.bf16.msra.mxu0 %v2184_v29  ;;  %2203 = vmatpush3.bf16.msra.mxu1 %v2200_v0 }
 0x518   : > { %1976 = vmatprep.mubr.msk.f32.mxu0 %vm1078_vm10, %v1239_v40  ;;  %1995 = vmatprep.mubr.msk.f32.mxu1 %vm1078_vm10, %v1239_v40 }
 0x519   : > { %2189 = vmatprep.subr.bf16.mxu0 %v2188_v43  ;;  %2205 = vmatprep.subr.bf16.mxu1 %v2204_v44 }
 0x51b   : > { %2191 = vmatpush3.bf16.msra.mxu0 %v2188_v43  ;;  %2207 = vmatpush3.bf16.msra.mxu1 %v2204_v44 }
 0x51c   : > { %2193 = vmatprep.subr.bf16.mxu0 %v2192_v48  ;;  %2209 = vmatprep.subr.bf16.mxu1 %v2208_v49 }
 0x51f   : > { %2195 = vmatpush3.bf16.msra.mxu0 %v2192_v48  ;;  %2211 = vmatpush3.bf16.msra.mxu1 %v2208_v49 }
 0x520   : > { %2197 = vmatprep.subr.bf16.mxu0 %v2196_v54  ;;  %2213 = vmatprep.subr.bf16.mxu1 %v2212_v10 }
 0x523   : > { %2199 = vmatpush3.bf16.msra.mxu0 %v2196_v54  ;;  %2215 = vmatpush3.bf16.msra.mxu1 %v2212_v10 }
 0x526   : > { %1977 = vmatmul.mubr.msk.f32.vlgmr.msra.gmra.mrb[8].mxu0 %vm1078_vm10, %v1240_v41  ;;  %1996 = vmatmul.mubr.msk.f32.vlgmr.msra.gmra.mrb[8].mxu1 %vm1078_vm10, %v1240_v41 }
 0x5e9   : > { %v1940_v7 = vpop.f32.mrb[6].mxu0  ;;  %v1959_v11 = vpop.f32.mrb[6].mxu1 }
 0x5ea   : > { %v1415_v55 = vmax.f32 %v1940_v7, %v1959_v11  ;;  %v1321_v56 = vpop.f32.mrb[7].mxu0  ;;  %v1405_v58 = vpop.f32.mrb[7].mxu1 }
 0x5eb   : > { %v1414_v59 = vmax.f32 %v1321_v56, %v1405_v58 }
 0x5f9   : > { %v1978_v60 = vpop.f32.mrb[8].mxu0  ;;  %v1997_v61 = vpop.f32.mrb[8].mxu1 }
 0x5fa   : > { %v1501_v62 = vmax.f32 %v1415_v55, %v1978_v60  ;;  %v1491_v63 = vpop.f32.mrb[9].mxu0  ;;  %v1577_v1 = vpop.f32.mrb[9].mxu1 }
 0x5fb   : > { %v1500_v2 = vmax.f32 %v1414_v59, %v1491_v63 }
 0x5fc   : > { %v1587_v3 = vmax.f32 %v1501_v62, %v1997_v61 }
 0x5fd   : > { %v1586_v4 = vmax.f32 %v1500_v2, %v1577_v1 }
 0x5fe   : > { %1590 = vst.msk [vmem:[%s293_s10 + $0x8] sm:$0xff] %vm1588_vm13, %v1587_v3 }
 0x5ff   : > { %1589 = vst.msk [vmem:[%s293_s10] sm:$0xff] %vm1588_vm13, %v1586_v4 }
 0x600 PF: > { %s18_s24 = sadd.s32 1, %s2303_s24  }
 0x601   : > { %p15_p3 = scmp.ge.s32.totalorder %s18_s24, 4  }
 0x603   :  { %17 = sbr.rel (!%p15_p3) target bundleno = 1 (0x1), region = 89 }
 0x60a   :  { %1612 = vsyncpa [#allocation7], 1 }
 0x60b   :  { %1614 = vsyncpa [#allocation7 + $0x1], 1 }

</bundles_post_ra>
